<compile_context>
chip_gen: v5e
topology: v5e:2x2
jax: 0.10.0
libtpu: 0.0.40
codegen_flags: <defaults>
</compile_context>

<pallas_src>
import functools

import jax
import jax.numpy as jnp
from jax.experimental import pallas as pl
from jax.experimental.pallas import tpu as pltpu


# ------------------------------- fused kernel --------------------------------

def _fused_aug_kernel(gate_ref, mh_ref, mv_ref, mean_ref, istd_ref,
                      p_ref, x_ref, o_ref, *, sol_thr, do_blur):
    """Flips + ColorJitter + Grayscale + GaussianBlur + Solarize + Normalize.

    gate_ref : (num_blocks,) int32 (scalar prefetch)  -- 1 if any sample in the
               block needs the Gaussian blur.
    mh_ref   : (P, P)   W-direction (lane) blur matrix, applied as x @ mh.
    mv_ref   : (P, P)   H-direction (sublane) blur matrix, applied as mv @ x.
    mean_ref : (1, C, 1, 1) per-channel mean.
    istd_ref : (1, C, 1, 1) per-channel 1/std.
    p_ref    : (TN, 8, 1, 1) per-sample params:
               [brightness, contrast, saturation, gs_flag, hflip, vflip, blur, solarize]
    x_ref    : (TN, C, H, W) image block, o_ref same shape.
    """
    tn, C, H, W = x_ref.shape
    x = x_ref[...].astype(jnp.float32)
    p = p_ref[...]                              # (TN, 8, 1, 1)

    b_f = p[:, 0:1]
    c_f = p[:, 1:2]
    s_f = p[:, 2:3]
    gs_f = p[:, 3:4]
    hf_f = p[:, 4:5]
    vf_f = p[:, 5:6]
    bl_f = p[:, 6:7]
    so_f = p[:, 7:8]

    # Anti-identity (flip) matrix from 2-D iota; flips run on the idle MXU.
    rr = jax.lax.broadcasted_iota(jnp.int32, (W, W), 0)
    cc = jax.lax.broadcasted_iota(jnp.int32, (W, W), 1)
    J = (rr + cc == W - 1).astype(jnp.float32)

    def right_mul(v, m):
        # apply (W, W) matrix along the lane (W) axis: plain 2-D MXU matmul.
        v2 = v.reshape(tn * C * H, W)
        return jnp.dot(v2, m, preferred_element_type=jnp.float32
                       ).reshape(tn, C, H, W)

    def left_mul(m, v):
        # apply (H, H) matrix along the sublane (H) axis: batched MXU matmul.
        v3 = v.reshape(tn * C, H, W)
        mb = jnp.broadcast_to(m, (tn * C, H, H))
        return jnp.einsum('bkh,bhw->bkw', mb, v3,
                          preferred_element_type=jnp.float32
                          ).reshape(tn, C, H, W)

    # ---------------- random horizontal / vertical flips (per sample) ----------------
    x = jnp.where(hf_f > 0.5, right_mul(x, J), x)
    x = jnp.where(vf_f > 0.5, left_mul(J, x), x)

    # -------- ColorJitter (brightness / contrast / saturation) + RandomGrayscale -----
    def gray(v):
        return 0.299 * v[:, 0:1] + 0.587 * v[:, 1:2] + 0.114 * v[:, 2:3]

    x = jnp.clip(x * b_f, 0.0, 1.0)
    mg = jnp.mean(gray(x), axis=3, keepdims=True)
    mg = jnp.mean(mg, axis=2, keepdims=True)                 # per-sample (TN,1,1,1)
    x = jnp.clip(mg + c_f * (x - mg), 0.0, 1.0)
    g = gray(x)
    x = jnp.clip(g + s_f * (x - g), 0.0, 1.0)
    # TODO(synk): hue adjustment (RGB<->HSV) and Kornia's random op ordering not implemented.
    g = gray(x)
    x = jnp.where(gs_f > 0.5, g, x)

    mean_c = mean_ref[...]
    istd_c = istd_ref[...]

    def finish(v):
        # RandomSolarize (per sample) + Normalize, one dense store.
        vs = jnp.where(v < sol_thr, v, 1.0 - v)
        vs = jnp.where(so_f > 0.5, vs, v)
        o_ref[...] = ((vs - mean_c) * istd_c).astype(o_ref.dtype)

    if do_blur:
        gate = gate_ref[pl.program_id(0)]

        @pl.when(gate != 0)
        def _():
            xb = right_mul(x, mh_ref[...])      # separable Gaussian, W direction
            xb = left_mul(mv_ref[...], xb)      # H direction
            finish(jnp.where(bl_f > 0.5, xb, x))

        @pl.when(gate == 0)
        def _():
            finish(x)
    else:
        finish(x)


# ------------------------------ pallas_call wrapper ---------------------------------

def _pick_block_n(N, C, H, W, budget_bytes=4 << 20):
    """Largest divisor of N whose (padded, double-buffered, in+out) block fits budget."""
    hp = ((H + 7) // 8) * 8
    wp = ((W + 127) // 128) * 128
    per_sample = C * hp * wp * 4 * 4            # f32, input+output, double-buffered
    tn = int(max(1, min(N, budget_bytes // per_sample)))
    while N % tn:
        tn -= 1
    return tn


def fused_augment(x, params, gate, mh, mv, mean_arr, istd_arr, *,
                  sol_thr, do_blur, tn):
    N, C, H, W = x.shape
    nb = N // tn
    kern = functools.partial(_fused_aug_kernel, sol_thr=sol_thr, do_blur=do_blur)

    grid_spec = pltpu.PrefetchScalarGridSpec(
        num_scalar_prefetch=1,
        grid=(nb,),
        in_specs=[
            pl.BlockSpec((W, W), lambda i, g: (0, 0)),                 # mh
            pl.BlockSpec((H, H), lambda i, g: (0, 0)),                 # mv
            pl.BlockSpec((1, C, 1, 1), lambda i, g: (0, 0, 0, 0)),     # mean
            pl.BlockSpec((1, C, 1, 1), lambda i, g: (0, 0, 0, 0)),     # 1/std
            pl.BlockSpec((tn, 8, 1, 1), lambda i, g: (i, 0, 0, 0)),    # per-sample params
            pl.BlockSpec((tn, C, H, W), lambda i, g: (i, 0, 0, 0)),    # images
        ],
        out_specs=pl.BlockSpec((tn, C, H, W), lambda i, g: (i, 0, 0, 0)),
    )
    return pl.pallas_call(
        kern,
        out_shape=jax.ShapeDtypeStruct((N, C, H, W), jnp.float32),
        grid_spec=grid_spec,
        compiler_params=pltpu.CompilerParams(
            dimension_semantics=("parallel",),          # shards across v7x's 2 TCs
            vmem_limit_bytes=32 * 1024 * 1024),
    )(gate, mh, mv, mean_arr, istd_arr, params, x)


# --------------------------------- module port ---------------------------------------

class DataAugmentation:
    def __init__(self, patch_size, crop_prob, hor_flip_prob, vert_flip_prob,
                 gauss_blur_divider, cj_brightness, cj_contrast, cj_saturation,
                 cj_hue, cj_prob, gs_prob, gauss_sigma, gauss_prob,
                 solarize_threshold, solarize_prob, mean, std):
        gb_ks = int(patch_size / gauss_blur_divider)
        gb_ks = int(gb_ks / 2)
        self.gb_ks = 2 * gb_ks + 1
        assert patch_size % 8 == 0, "patch_size must be a multiple of 8 (TPU sublane tiling)"
        self.patch_size = patch_size
        self.crop_prob = crop_prob
        self.hor_flip_prob = hor_flip_prob
        self.vert_flip_prob = vert_flip_prob
        self.cj_brightness = cj_brightness
        self.cj_contrast = cj_contrast
        self.cj_saturation = cj_saturation
        self.cj_hue = cj_hue
        self.cj_prob = cj_prob
        self.gs_prob = gs_prob
        self.gauss_sigma = gauss_sigma
        self.gauss_prob = gauss_prob
        self.solarize_threshold = solarize_threshold
        self.solarize_prob = solarize_prob
        self.mean_arr = jnp.asarray(mean, jnp.float32).reshape(1, 3, 1, 1)
        self.istd_arr = (1.0 / jnp.asarray(std, jnp.float32)).reshape(1, 3, 1, 1)

    def _blur_matrix(self, sigma):
        """(P, P) banded matrix of 1-D Gaussian taps with 'reflect' boundary."""
        P, ksz = self.patch_size, self.gb_ks
        pad = (ksz - 1) // 2
        idx = jnp.arange(ksz, dtype=jnp.float32) - (ksz - 1) / 2.0
        g = jnp.exp(-0.5 * (idx / sigma) ** 2)
        g = g / jnp.sum(g)
        pos = jnp.arange(P)
        M = jnp.zeros((P, P), jnp.float32)
        for k in range(ksz):
            src = pos + (k - pad)
            src = jnp.where(src < 0, -src, src)
            src = jnp.where(src > P - 1, 2 * (P - 1) - src, src)
            M = M + g[k] * (src[:, None] == pos[None, :]).astype(jnp.float32)
        return M        # out[v] = sum_w M[v, w] * in[w]

    def __call__(self, x, key):
        N, C, _, _ = x.shape
        assert C == 3, "DataAugmentation expects RGB input"
        P = self.patch_size
        ks = jax.random.split(key, 10)

        # trans_1: RandomResizedCrop -> deterministic bilinear resize (glue).
        # TODO(synk): per-sample random crop-box sampling / crop_prob (Kornia RNG) not implemented.
        x = jax.image.resize(x, (N, C, P, P), method="bilinear").astype(jnp.float32)

        hor = jax.random.uniform(ks[0], (N,)) < self.hor_flip_prob
        ver = jax.random.uniform(ks[1], (N,)) < self.vert_flip_prob

        cj_on = jax.random.uniform(ks[2], (N,)) < self.cj_prob
        b = jax.random.uniform(ks[3], (N,), minval=max(0.0, 1.0 - self.cj_brightness),
                               maxval=1.0 + self.cj_brightness)
        c = jax.random.uniform(ks[4], (N,), minval=max(0.0, 1.0 - self.cj_contrast),
                               maxval=1.0 + self.cj_contrast)
        s = jax.random.uniform(ks[5], (N,), minval=max(0.0, 1.0 - self.cj_saturation),
                               maxval=1.0 + self.cj_saturation)
        b = jnp.where(cj_on, b, 1.0)
        c = jnp.where(cj_on, c, 1.0)
        s = jnp.where(cj_on, s, 1.0)
        gs = jax.random.uniform(ks[6], (N,)) < self.gs_prob

        do_blur = self.gauss_prob > 0
        if do_blur:
            sigma = jax.random.uniform(ks[7], (), minval=self.gauss_sigma[0],
                                       maxval=self.gauss_sigma[1])
            M = self._blur_matrix(sigma)
            blur_on = jax.random.uniform(ks[8], (N,)) < self.gauss_prob
        else:
            M = jnp.eye(P, dtype=jnp.float32)
            blur_on = jnp.zeros((N,), bool)
        mh = M.T          # W-direction: x @ M.T
        mv = M            # H-direction: M @ x

        sol_on = jax.random.uniform(ks[9], (N,)) < self.solarize_prob

        params = jnp.stack(
            [b, c, s,
             gs.astype(jnp.float32), hor.astype(jnp.float32), ver.astype(jnp.float32),
             blur_on.astype(jnp.float32), sol_on.astype(jnp.float32)],
            axis=1).astype(jnp.float32).reshape(N, 8, 1, 1)

        tn = _pick_block_n(N, C, P, P)
        nb = N // tn
        if do_blur:
            gate = blur_on.reshape(nb, tn).any(axis=1).astype(jnp.int32)
        else:
            gate = jnp.zeros((nb,), jnp.int32)

        return fused_augment(
            x, params, gate, mh, mv, self.mean_arr, self.istd_arr,
            sol_thr=float(self.solarize_threshold) / 255.0,
            do_blur=bool(do_blur), tn=tn)


# ------------------------------------ demo -------------------------------------------

if __name__ == "__main__":
    key = jax.random.PRNGKey(0)
    aug = DataAugmentation(
        patch_size=32, crop_prob=1.0, hor_flip_prob=0.5, vert_flip_prob=0.5,
        gauss_blur_divider=10, cj_brightness=0.4, cj_contrast=0.4,
        cj_saturation=0.2, cj_hue=0.1, cj_prob=0.8, gs_prob=0.2,
        gauss_sigma=(0.1, 2.0), gauss_prob=1.0, solarize_threshold=128,
        solarize_prob=0.2, mean=(0.485, 0.456, 0.406), std=(0.229, 0.224, 0.225))

    k_data, k_aug = jax.random.split(key)
    x = jax.random.uniform(k_data, (2, 3, 32, 32), dtype=jnp.float32)
    y = aug(x, k_aug)
    y = jax.block_until_ready(y)
    assert y.shape == (2, 3, 32, 32) and y.dtype == jnp.float32
    assert bool(jnp.all(jnp.isfinite(y)))
    print("KERNEL_OK")
</pallas_src>

<mosaic_0001>
module attributes {stable_mosaic.version = 11 : i64} {
  func.func @_fused_aug_kernel(%arg0: i32, %arg1: memref<1xi32, #tpu.memory_space<smem>>, %arg2: memref<32x32xf32, #tpu.memory_space<vmem>>, %arg3: memref<32x32xf32, #tpu.memory_space<vmem>>, %arg4: memref<1x3x1x1xf32, #tpu.memory_space<vmem>>, %arg5: memref<1x3x1x1xf32, #tpu.memory_space<vmem>>, %arg6: memref<2x8x1x1xf32, #tpu.memory_space<vmem>>, %arg7: memref<2x3x32x32xf32, #tpu.memory_space<vmem>>, %arg8: memref<2x3x32x32xf32, #tpu.memory_space<vmem>>) attributes {dimension_semantics = [#tpu.dimension_semantics<parallel>], iteration_bounds = array<i64: 1>, scalar_prefetch = 1 : i64, scratch_operands = 0 : i64, tpu.core_type = #tpu.core_type<tc>, window_params = [{pipeline_mode = #tpu.pipeline_mode<synchronous>, transform_indices = @transform_0, window_bounds = array<i64: 32, 32>}, {pipeline_mode = #tpu.pipeline_mode<synchronous>, transform_indices = @transform_1, window_bounds = array<i64: 32, 32>}, {pipeline_mode = #tpu.pipeline_mode<synchronous>, transform_indices = @transform_2, window_bounds = array<i64: 1, 3, 1, 1>}, {pipeline_mode = #tpu.pipeline_mode<synchronous>, transform_indices = @transform_3, window_bounds = array<i64: 1, 3, 1, 1>}, {transform_indices = @transform_4, window_bounds = array<i64: 2, 8, 1, 1>}, {transform_indices = @transform_5, window_bounds = array<i64: 2, 3, 32, 32>}, {transform_indices = @transform_6, window_bounds = array<i64: 2, 3, 32, 32>}]} {
    %c0 = arith.constant 0 : index
    %c0_0 = arith.constant 0 : index
    %c0_1 = arith.constant 0 : index
    %c0_2 = arith.constant 0 : index
    %0 = vector.load %arg7[%c0, %c0_0, %c0_1, %c0_2] : memref<2x3x32x32xf32, #tpu.memory_space<vmem>>, vector<2x3x32x32xf32>
    %c0_3 = arith.constant 0 : index
    %c0_4 = arith.constant 0 : index
    %c0_5 = arith.constant 0 : index
    %c0_6 = arith.constant 0 : index
    %1 = vector.load %arg6[%c0_3, %c0_4, %c0_5, %c0_6] : memref<2x8x1x1xf32, #tpu.memory_space<vmem>>, vector<2x8x1x1xf32>
    %2 = vector.extract_strided_slice %1 {offsets = [0, 0, 0, 0], sizes = [2, 1, 1, 1], strides = [1, 1, 1, 1]} : vector<2x8x1x1xf32> to vector<2x1x1x1xf32>
    %3 = vector.extract_strided_slice %1 {offsets = [0, 1, 0, 0], sizes = [2, 1, 1, 1], strides = [1, 1, 1, 1]} : vector<2x8x1x1xf32> to vector<2x1x1x1xf32>
    %4 = vector.extract_strided_slice %1 {offsets = [0, 2, 0, 0], sizes = [2, 1, 1, 1], strides = [1, 1, 1, 1]} : vector<2x8x1x1xf32> to vector<2x1x1x1xf32>
    %5 = vector.extract_strided_slice %1 {offsets = [0, 3, 0, 0], sizes = [2, 1, 1, 1], strides = [1, 1, 1, 1]} : vector<2x8x1x1xf32> to vector<2x1x1x1xf32>
    %6 = vector.extract_strided_slice %1 {offsets = [0, 4, 0, 0], sizes = [2, 1, 1, 1], strides = [1, 1, 1, 1]} : vector<2x8x1x1xf32> to vector<2x1x1x1xf32>
    %7 = vector.extract_strided_slice %1 {offsets = [0, 5, 0, 0], sizes = [2, 1, 1, 1], strides = [1, 1, 1, 1]} : vector<2x8x1x1xf32> to vector<2x1x1x1xf32>
    %8 = vector.extract_strided_slice %1 {offsets = [0, 6, 0, 0], sizes = [2, 1, 1, 1], strides = [1, 1, 1, 1]} : vector<2x8x1x1xf32> to vector<2x1x1x1xf32>
    %9 = vector.extract_strided_slice %1 {offsets = [0, 7, 0, 0], sizes = [2, 1, 1, 1], strides = [1, 1, 1, 1]} : vector<2x8x1x1xf32> to vector<2x1x1x1xf32>
    %10 = tpu.iota {dimensions = array<i32: 0>} : vector<32x32xi32>
    %11 = tpu.iota {dimensions = array<i32: 1>} : vector<32x32xi32>
    %12 = arith.addi %10, %11 : vector<32x32xi32>
    %c31_i32 = arith.constant 31 : i32
    %13 = vector.broadcast %c31_i32 : i32 to vector<32x32xi32>
    %14 = arith.cmpi eq, %12, %13 : vector<32x32xi32>
    %15 = arith.extui %14 : vector<32x32xi1> to vector<32x32xi32>
    %16 = arith.sitofp %15 : vector<32x32xi32> to vector<32x32xf32>
    %cst = arith.constant 5.000000e-01 : f32
    %17 = vector.broadcast %cst : f32 to vector<2x1x1x1xf32>
    %18 = arith.cmpf ogt, %6, %17 : vector<2x1x1x1xf32>
    %19 = vector.shape_cast %0 : vector<2x3x32x32xf32> to vector<192x32xf32>
    %cst_7 = arith.constant dense<0.000000e+00> : vector<192x32xf32>
    %20 = tpu.matmul %19, %16, %cst_7 {dimension_numbers = #tpu.dot_dimension_numbers<[1], [0], [0], [1], [0, 0, 1, 1], [], []>} : vector<192x32xf32>, vector<32x32xf32>, vector<192x32xf32> -> vector<192x32xf32>
    %21 = vector.shape_cast %20 : vector<192x32xf32> to vector<2x3x32x32xf32>
    %22 = vector.shape_cast %18 : vector<2x1x1x1xi1> to vector<2x1x1x1xi1>
    %23 = vector.broadcast %22 : vector<2x1x1x1xi1> to vector<2x3x32x32xi1>
    %24 = arith.select %23, %21, %0 : vector<2x3x32x32xi1>, vector<2x3x32x32xf32>
    %cst_8 = arith.constant 5.000000e-01 : f32
    %25 = vector.broadcast %cst_8 : f32 to vector<2x1x1x1xf32>
    %26 = arith.cmpf ogt, %7, %25 : vector<2x1x1x1xf32>
    %27 = vector.shape_cast %24 : vector<2x3x32x32xf32> to vector<6x32x32xf32>
    %28 = vector.shape_cast %16 : vector<32x32xf32> to vector<1x32x32xf32>
    %29 = vector.broadcast %28 : vector<1x32x32xf32> to vector<6x32x32xf32>
    "tpu.trace_start"() <{level = 10 : i32, message = "bkh,bhw->bkw"}> : () -> ()
    %cst_9 = arith.constant dense<0.000000e+00> : vector<6x32x32xf32>
    %30 = tpu.matmul %29, %27, %cst_9 {dimension_numbers = #tpu.dot_dimension_numbers<[2], [1], [1], [2], [0, 0, 0, 1, 1, 2], [0], [0]>} : vector<6x32x32xf32>, vector<6x32x32xf32>, vector<6x32x32xf32> -> vector<6x32x32xf32>
    "tpu.trace_stop"() : () -> ()
    %31 = vector.shape_cast %30 : vector<6x32x32xf32> to vector<2x3x32x32xf32>
    %32 = vector.shape_cast %26 : vector<2x1x1x1xi1> to vector<2x1x1x1xi1>
    %33 = vector.broadcast %32 : vector<2x1x1x1xi1> to vector<2x3x32x32xi1>
    %34 = arith.select %33, %31, %24 : vector<2x3x32x32xi1>, vector<2x3x32x32xf32>
    %35 = vector.broadcast %2 : vector<2x1x1x1xf32> to vector<2x3x32x32xf32>
    %36 = arith.mulf %34, %35 : vector<2x3x32x32xf32>
    %cst_10 = arith.constant 0.000000e+00 : f32
    %cst_11 = arith.constant 1.000000e+00 : f32
    %37 = vector.broadcast %cst_10 : f32 to vector<2x3x32x32xf32>
    %38 = arith.maximumf %37, %36 : vector<2x3x32x32xf32>
    %39 = vector.broadcast %cst_11 : f32 to vector<2x3x32x32xf32>
    %40 = arith.minimumf %39, %38 : vector<2x3x32x32xf32>
    %41 = vector.extract_strided_slice %40 {offsets = [0, 0, 0, 0], sizes = [2, 1, 32, 32], strides = [1, 1, 1, 1]} : vector<2x3x32x32xf32> to vector<2x1x32x32xf32>
    %cst_12 = arith.constant 2.990000e-01 : f32
    %42 = vector.broadcast %cst_12 : f32 to vector<2x1x32x32xf32>
    %43 = arith.mulf %42, %41 : vector<2x1x32x32xf32>
    %44 = vector.extract_strided_slice %40 {offsets = [0, 1, 0, 0], sizes = [2, 1, 32, 32], strides = [1, 1, 1, 1]} : vector<2x3x32x32xf32> to vector<2x1x32x32xf32>
    %cst_13 = arith.constant 5.870000e-01 : f32
    %45 = vector.broadcast %cst_13 : f32 to vector<2x1x32x32xf32>
    %46 = arith.mulf %45, %44 : vector<2x1x32x32xf32>
    %47 = arith.addf %43, %46 : vector<2x1x32x32xf32>
    %48 = vector.extract_strided_slice %40 {offsets = [0, 2, 0, 0], sizes = [2, 1, 32, 32], strides = [1, 1, 1, 1]} : vector<2x3x32x32xf32> to vector<2x1x32x32xf32>
    %cst_14 = arith.constant 1.140000e-01 : f32
    %49 = vector.broadcast %cst_14 : f32 to vector<2x1x32x32xf32>
    %50 = arith.mulf %49, %48 : vector<2x1x32x32xf32>
    %51 = arith.addf %47, %50 : vector<2x1x32x32xf32>
    %cst_15 = arith.constant dense<0.000000e+00> : vector<2x1x32xf32>
    %52 = vector.multi_reduction <add>, %51, %cst_15 [3] : vector<2x1x32x32xf32> to vector<2x1x32xf32>
    %53 = vector.shape_cast %52 : vector<2x1x32xf32> to vector<2x1x32x1xf32>
    %cst_16 = arith.constant 3.200000e+01 : f32
    %54 = vector.broadcast %cst_16 : f32 to vector<2x1x32x1xf32>
    %55 = arith.divf %53, %54 : vector<2x1x32x1xf32>
    %cst_17 = arith.constant dense<0.000000e+00> : vector<2x1x1xf32>
    %56 = vector.multi_reduction <add>, %55, %cst_17 [2] : vector<2x1x32x1xf32> to vector<2x1x1xf32>
    %57 = vector.shape_cast %56 : vector<2x1x1xf32> to vector<2x1x1x1xf32>
    %cst_18 = arith.constant 3.200000e+01 : f32
    %58 = vector.broadcast %cst_18 : f32 to vector<2x1x1x1xf32>
    %59 = arith.divf %57, %58 : vector<2x1x1x1xf32>
    %60 = vector.broadcast %59 : vector<2x1x1x1xf32> to vector<2x3x32x32xf32>
    %61 = arith.subf %40, %60 : vector<2x3x32x32xf32>
    %62 = vector.broadcast %3 : vector<2x1x1x1xf32> to vector<2x3x32x32xf32>
    %63 = arith.mulf %62, %61 : vector<2x3x32x32xf32>
    %64 = vector.broadcast %59 : vector<2x1x1x1xf32> to vector<2x3x32x32xf32>
    %65 = arith.addf %64, %63 : vector<2x3x32x32xf32>
    %cst_19 = arith.constant 0.000000e+00 : f32
    %cst_20 = arith.constant 1.000000e+00 : f32
    %66 = vector.broadcast %cst_19 : f32 to vector<2x3x32x32xf32>
    %67 = arith.maximumf %66, %65 : vector<2x3x32x32xf32>
    %68 = vector.broadcast %cst_20 : f32 to vector<2x3x32x32xf32>
    %69 = arith.minimumf %68, %67 : vector<2x3x32x32xf32>
    %70 = vector.extract_strided_slice %69 {offsets = [0, 0, 0, 0], sizes = [2, 1, 32, 32], strides = [1, 1, 1, 1]} : vector<2x3x32x32xf32> to vector<2x1x32x32xf32>
    %cst_21 = arith.constant 2.990000e-01 : f32
    %71 = vector.broadcast %cst_21 : f32 to vector<2x1x32x32xf32>
    %72 = arith.mulf %71, %70 : vector<2x1x32x32xf32>
    %73 = vector.extract_strided_slice %69 {offsets = [0, 1, 0, 0], sizes = [2, 1, 32, 32], strides = [1, 1, 1, 1]} : vector<2x3x32x32xf32> to vector<2x1x32x32xf32>
    %cst_22 = arith.constant 5.870000e-01 : f32
    %74 = vector.broadcast %cst_22 : f32 to vector<2x1x32x32xf32>
    %75 = arith.mulf %74, %73 : vector<2x1x32x32xf32>
    %76 = arith.addf %72, %75 : vector<2x1x32x32xf32>
    %77 = vector.extract_strided_slice %69 {offsets = [0, 2, 0, 0], sizes = [2, 1, 32, 32], strides = [1, 1, 1, 1]} : vector<2x3x32x32xf32> to vector<2x1x32x32xf32>
    %cst_23 = arith.constant 1.140000e-01 : f32
    %78 = vector.broadcast %cst_23 : f32 to vector<2x1x32x32xf32>
    %79 = arith.mulf %78, %77 : vector<2x1x32x32xf32>
    %80 = arith.addf %76, %79 : vector<2x1x32x32xf32>
    %81 = vector.broadcast %80 : vector<2x1x32x32xf32> to vector<2x3x32x32xf32>
    %82 = arith.subf %69, %81 : vector<2x3x32x32xf32>
    %83 = vector.broadcast %4 : vector<2x1x1x1xf32> to vector<2x3x32x32xf32>
    %84 = arith.mulf %83, %82 : vector<2x3x32x32xf32>
    %85 = vector.broadcast %80 : vector<2x1x32x32xf32> to vector<2x3x32x32xf32>
    %86 = arith.addf %85, %84 : vector<2x3x32x32xf32>
    %cst_24 = arith.constant 0.000000e+00 : f32
    %cst_25 = arith.constant 1.000000e+00 : f32
    %87 = vector.broadcast %cst_24 : f32 to vector<2x3x32x32xf32>
    %88 = arith.maximumf %87, %86 : vector<2x3x32x32xf32>
    %89 = vector.broadcast %cst_25 : f32 to vector<2x3x32x32xf32>
    %90 = arith.minimumf %89, %88 : vector<2x3x32x32xf32>
    %91 = vector.extract_strided_slice %90 {offsets = [0, 0, 0, 0], sizes = [2, 1, 32, 32], strides = [1, 1, 1, 1]} : vector<2x3x32x32xf32> to vector<2x1x32x32xf32>
    %cst_26 = arith.constant 2.990000e-01 : f32
    %92 = vector.broadcast %cst_26 : f32 to vector<2x1x32x32xf32>
    %93 = arith.mulf %92, %91 : vector<2x1x32x32xf32>
    %94 = vector.extract_strided_slice %90 {offsets = [0, 1, 0, 0], sizes = [2, 1, 32, 32], strides = [1, 1, 1, 1]} : vector<2x3x32x32xf32> to vector<2x1x32x32xf32>
    %cst_27 = arith.constant 5.870000e-01 : f32
    %95 = vector.broadcast %cst_27 : f32 to vector<2x1x32x32xf32>
    %96 = arith.mulf %95, %94 : vector<2x1x32x32xf32>
    %97 = arith.addf %93, %96 : vector<2x1x32x32xf32>
    %98 = vector.extract_strided_slice %90 {offsets = [0, 2, 0, 0], sizes = [2, 1, 32, 32], strides = [1, 1, 1, 1]} : vector<2x3x32x32xf32> to vector<2x1x32x32xf32>
    %cst_28 = arith.constant 1.140000e-01 : f32
    %99 = vector.broadcast %cst_28 : f32 to vector<2x1x32x32xf32>
    %100 = arith.mulf %99, %98 : vector<2x1x32x32xf32>
    %101 = arith.addf %97, %100 : vector<2x1x32x32xf32>
    %cst_29 = arith.constant 5.000000e-01 : f32
    %102 = vector.broadcast %cst_29 : f32 to vector<2x1x1x1xf32>
    %103 = arith.cmpf ogt, %5, %102 : vector<2x1x1x1xf32>
    %104 = vector.shape_cast %103 : vector<2x1x1x1xi1> to vector<2x1x1x1xi1>
    %105 = vector.broadcast %104 : vector<2x1x1x1xi1> to vector<2x3x32x32xi1>
    %106 = vector.shape_cast %101 : vector<2x1x32x32xf32> to vector<2x1x32x32xf32>
    %107 = vector.broadcast %106 : vector<2x1x32x32xf32> to vector<2x3x32x32xf32>
    %108 = arith.select %105, %107, %90 : vector<2x3x32x32xi1>, vector<2x3x32x32xf32>
    %c0_30 = arith.constant 0 : index
    %c0_31 = arith.constant 0 : index
    %c0_32 = arith.constant 0 : index
    %c0_33 = arith.constant 0 : index
    %109 = vector.load %arg4[%c0_30, %c0_31, %c0_32, %c0_33] : memref<1x3x1x1xf32, #tpu.memory_space<vmem>>, vector<1x3x1x1xf32>
    %c0_34 = arith.constant 0 : index
    %c0_35 = arith.constant 0 : index
    %c0_36 = arith.constant 0 : index
    %c0_37 = arith.constant 0 : index
    %110 = vector.load %arg5[%c0_34, %c0_35, %c0_36, %c0_37] : memref<1x3x1x1xf32, #tpu.memory_space<vmem>>, vector<1x3x1x1xf32>
    %111 = arith.index_cast %arg0 : i32 to index
    %112 = memref.load %arg1[%111] : memref<1xi32, #tpu.memory_space<smem>>
    %c0_i32 = arith.constant 0 : i32
    %113 = arith.cmpi ne, %112, %c0_i32 : i32
    %114 = arith.extui %113 : i1 to i32
    %c0_i32_38 = arith.constant 0 : i32
    %115 = arith.cmpi ne, %114, %c0_i32_38 : i32
    scf.if %115 {
      %c0_41 = arith.constant 0 : index
      %c0_42 = arith.constant 0 : index
      %119 = vector.load %arg2[%c0_41, %c0_42] : memref<32x32xf32, #tpu.memory_space<vmem>>, vector<32x32xf32>
      %120 = vector.shape_cast %108 : vector<2x3x32x32xf32> to vector<192x32xf32>
      %cst_43 = arith.constant dense<0.000000e+00> : vector<192x32xf32>
      %121 = tpu.matmul %120, %119, %cst_43 {dimension_numbers = #tpu.dot_dimension_numbers<[1], [0], [0], [1], [0, 0, 1, 1], [], []>} : vector<192x32xf32>, vector<32x32xf32>, vector<192x32xf32> -> vector<192x32xf32>
      %122 = vector.shape_cast %121 : vector<192x32xf32> to vector<2x3x32x32xf32>
      %c0_44 = arith.constant 0 : index
      %c0_45 = arith.constant 0 : index
      %123 = vector.load %arg3[%c0_44, %c0_45] : memref<32x32xf32, #tpu.memory_space<vmem>>, vector<32x32xf32>
      %124 = vector.shape_cast %122 : vector<2x3x32x32xf32> to vector<6x32x32xf32>
      %125 = vector.shape_cast %123 : vector<32x32xf32> to vector<1x32x32xf32>
      %126 = vector.broadcast %125 : vector<1x32x32xf32> to vector<6x32x32xf32>
      "tpu.trace_start"() <{level = 10 : i32, message = "bkh,bhw->bkw"}> : () -> ()
      %cst_46 = arith.constant dense<0.000000e+00> : vector<6x32x32xf32>
      %127 = tpu.matmul %126, %124, %cst_46 {dimension_numbers = #tpu.dot_dimension_numbers<[2], [1], [1], [2], [0, 0, 0, 1, 1, 2], [0], [0]>} : vector<6x32x32xf32>, vector<6x32x32xf32>, vector<6x32x32xf32> -> vector<6x32x32xf32>
      "tpu.trace_stop"() : () -> ()
      %128 = vector.shape_cast %127 : vector<6x32x32xf32> to vector<2x3x32x32xf32>
      %cst_47 = arith.constant 5.000000e-01 : f32
      %129 = vector.broadcast %cst_47 : f32 to vector<2x1x1x1xf32>
      %130 = arith.cmpf ogt, %8, %129 : vector<2x1x1x1xf32>
      %131 = vector.shape_cast %130 : vector<2x1x1x1xi1> to vector<2x1x1x1xi1>
      %132 = vector.broadcast %131 : vector<2x1x1x1xi1> to vector<2x3x32x32xi1>
      %133 = arith.select %132, %128, %108 : vector<2x3x32x32xi1>, vector<2x3x32x32xf32>
      %cst_48 = arith.constant 0.501960814 : f32
      %134 = vector.broadcast %cst_48 : f32 to vector<2x3x32x32xf32>
      %135 = arith.cmpf olt, %133, %134 : vector<2x3x32x32xf32>
      %cst_49 = arith.constant 1.000000e+00 : f32
      %136 = vector.broadcast %cst_49 : f32 to vector<2x3x32x32xf32>
      %137 = arith.subf %136, %133 : vector<2x3x32x32xf32>
      %138 = arith.select %135, %133, %137 : vector<2x3x32x32xi1>, vector<2x3x32x32xf32>
      %cst_50 = arith.constant 5.000000e-01 : f32
      %139 = vector.broadcast %cst_50 : f32 to vector<2x1x1x1xf32>
      %140 = arith.cmpf ogt, %9, %139 : vector<2x1x1x1xf32>
      %141 = vector.shape_cast %140 : vector<2x1x1x1xi1> to vector<2x1x1x1xi1>
      %142 = vector.broadcast %141 : vector<2x1x1x1xi1> to vector<2x3x32x32xi1>
      %143 = arith.select %142, %138, %133 : vector<2x3x32x32xi1>, vector<2x3x32x32xf32>
      %144 = vector.broadcast %109 : vector<1x3x1x1xf32> to vector<2x3x32x32xf32>
      %145 = arith.subf %143, %144 : vector<2x3x32x32xf32>
      %146 = vector.broadcast %110 : vector<1x3x1x1xf32> to vector<2x3x32x32xf32>
      %147 = arith.mulf %145, %146 : vector<2x3x32x32xf32>
      %c0_51 = arith.constant 0 : index
      %c0_52 = arith.constant 0 : index
      %c0_53 = arith.constant 0 : index
      %c0_54 = arith.constant 0 : index
      %148 = vector.load %arg8[%c0_51, %c0_52, %c0_53, %c0_54] : memref<2x3x32x32xf32, #tpu.memory_space<vmem>>, vector<2x3x32x32xf32>
      tpu.vector_store %arg8[%c0_51, %c0_52, %c0_53, %c0_54], %147 {strides = array<i32>} : memref<2x3x32x32xf32, #tpu.memory_space<vmem>>, vector<2x3x32x32xf32>,
    } else {
    }
    %c0_i32_39 = arith.constant 0 : i32
    %116 = arith.cmpi eq, %112, %c0_i32_39 : i32
    %117 = arith.extui %116 : i1 to i32
    %c0_i32_40 = arith.constant 0 : i32
    %118 = arith.cmpi ne, %117, %c0_i32_40 : i32
    scf.if %118 {
      %cst_41 = arith.constant 0.501960814 : f32
      %119 = vector.broadcast %cst_41 : f32 to vector<2x3x32x32xf32>
      %120 = arith.cmpf olt, %108, %119 : vector<2x3x32x32xf32>
      %cst_42 = arith.constant 1.000000e+00 : f32
      %121 = vector.broadcast %cst_42 : f32 to vector<2x3x32x32xf32>
      %122 = arith.subf %121, %108 : vector<2x3x32x32xf32>
      %123 = arith.select %120, %108, %122 : vector<2x3x32x32xi1>, vector<2x3x32x32xf32>
      %cst_43 = arith.constant 5.000000e-01 : f32
      %124 = vector.broadcast %cst_43 : f32 to vector<2x1x1x1xf32>
      %125 = arith.cmpf ogt, %9, %124 : vector<2x1x1x1xf32>
      %126 = vector.shape_cast %125 : vector<2x1x1x1xi1> to vector<2x1x1x1xi1>
      %127 = vector.broadcast %126 : vector<2x1x1x1xi1> to vector<2x3x32x32xi1>
      %128 = arith.select %127, %123, %108 : vector<2x3x32x32xi1>, vector<2x3x32x32xf32>
      %129 = vector.broadcast %109 : vector<1x3x1x1xf32> to vector<2x3x32x32xf32>
      %130 = arith.subf %128, %129 : vector<2x3x32x32xf32>
      %131 = vector.broadcast %110 : vector<1x3x1x1xf32> to vector<2x3x32x32xf32>
      %132 = arith.mulf %130, %131 : vector<2x3x32x32xf32>
      %c0_44 = arith.constant 0 : index
      %c0_45 = arith.constant 0 : index
      %c0_46 = arith.constant 0 : index
      %c0_47 = arith.constant 0 : index
      %133 = vector.load %arg8[%c0_44, %c0_45, %c0_46, %c0_47] : memref<2x3x32x32xf32, #tpu.memory_space<vmem>>, vector<2x3x32x32xf32>
      tpu.vector_store %arg8[%c0_44, %c0_45, %c0_46, %c0_47], %132 {strides = array<i32>} : memref<2x3x32x32xf32, #tpu.memory_space<vmem>>, vector<2x3x32x32xf32>,
    } else {
    }
    return
  }
  func.func @transform_0(%arg0: i32, %arg1: memref<1xi32, #tpu.memory_space<smem>>) -> (i32, i32) {
    %c0_i32 = arith.constant 0 : i32
    %c0_i32_0 = arith.constant 0 : i32
    %c0_i32_1 = arith.constant 0 : i32
    return %c0_i32, %c0_i32_0 : i32, i32
  }
  func.func @transform_1(%arg0: i32, %arg1: memref<1xi32, #tpu.memory_space<smem>>) -> (i32, i32) {
    %c0_i32 = arith.constant 0 : i32
    %c0_i32_0 = arith.constant 0 : i32
    %c0_i32_1 = arith.constant 0 : i32
    return %c0_i32, %c0_i32_0 : i32, i32
  }
  func.func @transform_2(%arg0: i32, %arg1: memref<1xi32, #tpu.memory_space<smem>>) -> (i32, i32, i32, i32) {
    %c0_i32 = arith.constant 0 : i32
    %c0_i32_0 = arith.constant 0 : i32
    %c0_i32_1 = arith.constant 0 : i32
    %c0_i32_2 = arith.constant 0 : i32
    %c0_i32_3 = arith.constant 0 : i32
    return %c0_i32, %c0_i32_0, %c0_i32_1, %c0_i32_2 : i32, i32, i32, i32
  }
  func.func @transform_3(%arg0: i32, %arg1: memref<1xi32, #tpu.memory_space<smem>>) -> (i32, i32, i32, i32) {
    %c0_i32 = arith.constant 0 : i32
    %c0_i32_0 = arith.constant 0 : i32
    %c0_i32_1 = arith.constant 0 : i32
    %c0_i32_2 = arith.constant 0 : i32
    %c0_i32_3 = arith.constant 0 : i32
    return %c0_i32, %c0_i32_0, %c0_i32_1, %c0_i32_2 : i32, i32, i32, i32
  }
  func.func @transform_4(%arg0: i32, %arg1: memref<1xi32, #tpu.memory_space<smem>>) -> (i32, i32, i32, i32) {
    %c0_i32 = arith.constant 0 : i32
    %c0_i32_0 = arith.constant 0 : i32
    %c0_i32_1 = arith.constant 0 : i32
    %c0_i32_2 = arith.constant 0 : i32
    return %arg0, %c0_i32, %c0_i32_0, %c0_i32_1 : i32, i32, i32, i32
  }
  func.func @transform_5(%arg0: i32, %arg1: memref<1xi32, #tpu.memory_space<smem>>) -> (i32, i32, i32, i32) {
    %c0_i32 = arith.constant 0 : i32
    %c0_i32_0 = arith.constant 0 : i32
    %c0_i32_1 = arith.constant 0 : i32
    %c0_i32_2 = arith.constant 0 : i32
    return %arg0, %c0_i32, %c0_i32_0, %c0_i32_1 : i32, i32, i32, i32
  }
  func.func @transform_6(%arg0: i32, %arg1: memref<1xi32, #tpu.memory_space<smem>>) -> (i32, i32, i32, i32) {
    %c0_i32 = arith.constant 0 : i32
    %c0_i32_0 = arith.constant 0 : i32
    %c0_i32_1 = arith.constant 0 : i32
    %c0_i32_2 = arith.constant 0 : i32
    return %arg0, %c0_i32, %c0_i32_0, %c0_i32_1 : i32, i32, i32, i32
  }
}

</mosaic_0001>

<bundles_post_ra>
// kernel: tpu_custom_call.1
= control target key start
LH: loop header
LB: loop body
LE: loop exit
PB: predicated region body
PF: predicated region fallthrough
CT: control target
= control target key end

     0   :  { %13 = vsyncpa [#allocation5], 0  ;;  %s3807_s0 = inlined_call_operand.<no memory space> [shape: s32[1], index: 0, kind: input, shape index: {}]   ;;  %s3808_s1 = inlined_call_operand.hbm [shape: f32[32,32], index: 1, kind: input, shape index: {}]   ;;  %s3809_s2 = inlined_call_operand.hbm [shape: f32[32,32], index: 2, kind: input, shape index: {}]   ;;  %s3810_s3 = inlined_call_operand.vmem [shape: f32[1,3,1,1], index: 3, kind: input, shape index: {}]   ;;  %s3811_s4 = inlined_call_operand.vmem [shape: f32[1,3,1,1], index: 4, kind: input, shape index: {}]   ;;  %s3812_s5 = inlined_call_operand.vmem [shape: f32[2,8,1,1], index: 5, kind: input, shape index: {}]   ;;  %s3813_s6 = inlined_call_operand.hbm [shape: f32[2,3,32,32], index: 6, kind: input, shape index: {}]   ;;  %s3814_s7 = inlined_call_operand.hbm [shape: f32[2,3,32,32], index: 7, kind: output, shape index: {}]  }
   0x1   :  { %14 = vsyncpa [#allocation8], 0 }
   0x2   :  { %15 = vsyncpa [#allocation6], 0  ;;  %s33_s26 = sshll.u32 %s3809_s2, 4  ;;  %s2250_s27 = smov [#allocation7]   ;;  %s34_s26 = int_to_ptr.hbm [resolvable:$true] %s33_s26 }
   0x3   :  { %s35_s28 = sshll.u32 %s2250_s27, 4  ;;  %s20_s8 = sshll.u32 %s3808_s1, 4  ;;  %s36_s28 = int_to_ptr.vmem [resolvable:$true] %s35_s28  ;;  %s21_s8 = int_to_ptr.hbm [resolvable:$true] %s20_s8 }
   0x4   :  { %s2251_s9 = smov 128   ;;  %s2252_s10 = smov 8  }
   0x5   :  { %41 = dma.hbm_to_vmem [thread:$0]  %s34_s26, 512, %s36_s28, [#allocation8], %s2251_s9, %s2251_s9, %s2252_s10  }
   0x6   :  { %s2253_s11 = smov [#allocation4]   ;;  %s52_s2 = sshll.u32 %s3813_s6, 4  ;;  %s53_s2 = int_to_ptr.hbm [resolvable:$true] %s52_s2 }
   0x7   :  { %s22_s12 = sshll.u32 %s2253_s11, 4  ;;  %s2254_s1 = smov [#allocation9]   ;;  %s23_s12 = int_to_ptr.vmem [resolvable:$true] %s22_s12 }
   0x8   :  { %28 = dma.hbm_to_vmem [thread:$0]  %s21_s8, 512, %s23_s12, [#allocation5], %s2251_s9, %s2251_s9, %s2252_s10  }
   0x9   :  { %s54_s15 = sshll.u32 %s2254_s1, 4  ;;  %s55_s15 = int_to_ptr.vmem [resolvable:$true] %s54_s15 }
   0xa   :  { %60 = dma.hbm_to_vmem [thread:$0]  %s53_s2, 3072, %s55_s15, [#allocation8], %s2251_s9, %s2251_s9, %s2252_s10  }
   0xb   :  { %2244 = dma.done.wait [#allocation5], 512  }
   0xc   :  { %2245 = vsyncadd [#allocation5], 4294966784 }
   0xd   :  { %2246 = dma.done.wait [#allocation8], 3584  }
   0xe   :  { %2247 = vsyncadd [#allocation8], 4294963712  ;;  %v113_v0 = vlaneseq  ;;  %v2255_v1 = vmov 0   ;;  %v2330_v9 = vld [vmem:[%s3812_s5 + $0x6] sm:$0x1]  ;;  %v2256_v21 = vmov 1.0  }
   0xf   :  { %2131 = vset.pattern.permute.xlu0 %v2255_v1  ;;  %2132 = vset.pattern.permute.xlu1 %v2255_v1  ;;  %v2335_v10 = vld [vmem:[%s3812_s5 + $0x7] sm:$0x1]  ;;  %v2340_v11 = vld [vmem:[%s3812_s5 + $0xe] sm:$0x1]  ;;  %v2345_v12 = vld [vmem:[%s3812_s5 + $0xf] sm:$0x1] }
  0x10   :  { %v114_v2 = vshrl.u32 %v113_v0, 7  ;;  %v119_v3 = vand.u32 127, %v113_v0  ;;  %2133 = vset.pattern.permute.xlu2 %v2255_v1  ;;  %v2350_v13 = vld [vmem:[%s3810_s3] sm:$0x1]  ;;  %v2355_v14 = vld [vmem:[%s3810_s3 + $0x1] sm:$0x1] }
  0x11   :  { %v2362_v16 = vld [vmem:[%s3810_s3 + $0x2] sm:$0x1]  ;;  %v2367_v17 = vld [vmem:[%s3811_s4] sm:$0x1]  ;;  %v2372_v18 = vld [vmem:[%s3811_s4 + $0x1] sm:$0x1] }
  0x12   :  { %v117_v4 = vadd.s32 24, %v114_v2  ;;  %v116_v5 = vadd.s32 16, %v114_v2  ;;  %v115_v6 = vadd.s32 8, %v114_v2  ;;  %v2377_v19 = vld [vmem:[%s3811_s4 + $0x2] sm:$0x1]  ;;  %v2381_v20 = vadd.s32 %v119_v3, %v114_v2  ;;  %v2429_v27 = vld [vmem:[#allocation9 + $0x8] sm:$0xff] }
  0x13   :  { %v101_v22 = vld [vmem:[%s3812_s5 + $0x4] sm:$0x1]  ;;  %vm138_vm5 = vcmask 261120   ;;  %v2431_v28 = vld [vmem:[#allocation9 + $0x68] sm:$0xff]  ;;  %v2437_v29 = vld [vmem:[#allocation9 + $0x10] sm:$0xff]  ;;  %p2045_p0 = scmp.eq.s32.totalorder %s3807_s0, 0 }
  0x14   :  { %v2323_v7 = vadd.s32 %v119_v3, %v117_v4  ;;  %v2325_v8 = vadd.s32 %v119_v3, %v116_v5  ;;  %v2357_v15 = vadd.s32 %v119_v3, %v115_v6  ;;  %vm136_vm3 = vcmp.gt.f32.partialorder %v101_v22, 0.5  ;;  %v2407_v25 = vld [vmem:[#allocation9] sm:$0xff]  ;;  %v2439_v30 = vld [vmem:[#allocation9 + $0x70] sm:$0xff]  ;;  %v76_v32 = vld [vmem:[#allocation9 + $0x18] sm:$0xff] }
  0x15   :  { %v300_v23 = vsel %vm136_vm3, 1, %v2255_v1  ;;  %vm124_vm4 = vcmp.eq.s32.totalorder %v2381_v20, 31  ;;  %v2417_v26 = vld [vmem:[#allocation9 + $0x60] sm:$0xff]  ;;  %v2449_v33 = vld [vmem:[#allocation9 + $0x78] sm:$0xff]  ;;  %v2456_v35 = vld [vmem:[#allocation9 + $0x88] sm:$0xff]  ;;  %v2257_v5 = vmov 0.0  }
  0x16   :  { %vm127_vm0 = vcmp.eq.s32.totalorder %v2323_v7, 31  ;;  %vm126_vm1 = vcmp.eq.s32.totalorder %v2325_v8, 31  ;;  %vm125_vm2 = vcmp.eq.s32.totalorder %v2357_v15, 31  ;;  %v302_v24 = vperm.slane %v300_v23, 0  ;;  %v2445_v31 = vld [vmem:[#allocation9 + $0x80] sm:$0xff]  ;;  %v2467_v38 = vld [vmem:[#allocation9 + $0xa8] sm:$0xff] }
  0x17   :  { %1993 = vmatpush.msk.msra.mxu0 %vm127_vm0, %v2256_v21  ;;  %2095 = vmatpush.msk.msra.mxu1 %vm127_vm0, %v2256_v21  ;;  %v2451_v34 = vld [vmem:[#allocation9 + $0xa0] sm:$0xff]  ;;  %v109_v37 = vld [vmem:[%s3812_s5 + $0xc] sm:$0x1]  ;;  %v2472_v41 = vld [vmem:[#allocation9 + $0x90] sm:$0xff]  ;;  %v2547_v6 = vsel %vm124_vm4, 1.0, %v2257_v5  ;;  %v2596_v15 = vsel %vm126_vm1, 1.0, %v2257_v5 }
  0x18   :  { %2096 = vmatpush.msk.msra.mxu2 %vm127_vm0, %v2256_v21  ;;  %2097 = vmatpush.msk.msra.mxu3 %vm127_vm0, %v2256_v21  ;;  %v2462_v36 = vld [vmem:[#allocation9 + $0x20] sm:$0xff]  ;;  %vm137_vm6 = vcmp.gt.f32.partialorder %v109_v37, 0.5  ;;  %v2478_v42 = vld [vmem:[#allocation9 + $0x28] sm:$0xff]  ;;  %v2480_v43 = vld [vmem:[#allocation9 + $0xb0] sm:$0xff] }
  0x19   :  { %1994 = vmatpush.msk.msra.mxu0 %vm126_vm1, %v2256_v21  ;;  %2098 = vmatpush.msk.msra.mxu1 %vm126_vm1, %v2256_v21  ;;  %v301_v39 = vsel %vm137_vm6, 1, %v2255_v1  ;;  %v2484_v44 = vld [vmem:[#allocation9 + $0x98] sm:$0xff]  ;;  %v2490_v45 = vld [vmem:[#allocation9 + $0x30] sm:$0xff]  ;;  %v2502_v48 = vld [vmem:[#allocation9 + $0x40] sm:$0xff] }
  0x1a   :  { %2099 = vmatpush.msk.msra.mxu2 %vm126_vm1, %v2256_v21  ;;  %2100 = vmatpush.msk.msra.mxu3 %vm126_vm1, %v2256_v21  ;;  %v303_v40 = vperm.slane %v301_v39, 0  ;;  %v2492_v46 = vld [vmem:[#allocation9 + $0xb8] sm:$0xff]  ;;  %v2506_v49 = vld [vmem:[#allocation9 + $0x48] sm:$0xff]  ;;  %v2510_v50 = vld [vmem:[#allocation9 + $0x50] sm:$0xff] }
  0x1b   :  { %1995 = vmatpush.msk.msra.mxu0 %vm125_vm2, %v2256_v21  ;;  %2101 = vmatpush.msk.msra.mxu1 %vm125_vm2, %v2256_v21  ;;  %v2498_v47 = vld [vmem:[#allocation9 + $0x38] sm:$0xff]  ;;  %v102_v54 = vld [vmem:[%s3812_s5 + $0x5] sm:$0x1] }
  0x1c   :  { %305 = vperm.xlu0 %2131, %v302_v24   ;;  %2102 = vmatpush.msk.msra.mxu2 %vm125_vm2, %v2256_v21  ;;  %v2514_v51 = vld [vmem:[#allocation9 + $0x58] sm:$0xff]  ;;  %vm336_vm7 = vcmp.gt.f32.partialorder %v102_v54, 0.5 }
  0x1d   :  { %1996 = vmatpush.msk.msra.mxu0 %vm124_vm4, %v2256_v21  ;;  %2104 = vmatpush.msk.msra.mxu1 %vm124_vm4, %v2256_v21  ;;  %v524_v57 = vsel %vm336_vm7, 1, %v2255_v1 }
  0x1e   :  { %1997 = vmatmul.msk.f32.vlgmr.msra.gmra.mxu0 %vm138_vm5, %v2407_v25  ;;  %2009 = vmatmul.msk.f32.vlgmr.msra.gmra.mxu1 %vm138_vm5, %v2417_v26  ;;  %v526_v58 = vperm.slane %v524_v57, 0 }
  0x1f   :  { %2105 = vmatpush.msk.msra.mxu2 %vm124_vm4, %v2256_v21  ;;  %2103 = vmatpush.msk.msra.mxu3 %vm125_vm2, %v2256_v21 }
  0x20   :  { %2013 = vmatmul.msk.f32.vlgmr.msra.gmra.mxu2 %vm138_vm5, %v2445_v31  ;;  %529 = vperm.xlu1 %2132, %v526_v58  }
  0x21   :  { %2106 = vmatpush.msk.msra.mxu3 %vm124_vm4, %v2256_v21 }
  0x22   :  { %2017 = vmatmul.msk.f32.vlgmr.msra.gmra.mxu3 %vm138_vm5, %v2451_v34 }
  0x24   :  { %308 = vperm.xlu0 %2131, %v303_v40  }
  0x26   :  { %1998 = vmatmul.msk.f32.gmra.mxu0 %vm138_vm5, %v2429_v27  ;;  %2010 = vmatmul.msk.f32.gmra.mxu1 %vm138_vm5, %v2431_v28 }
  0x28   :  { %2014 = vmatmul.msk.f32.gmra.mxu2 %vm138_vm5, %v2456_v35 }
  0x2a   :  { %2018 = vmatmul.msk.f32.gmra.mxu3 %vm138_vm5, %v2467_v38 }
  0x2e   :  { %1999 = vmatmul.msk.f32.gmra.mxu0 %vm138_vm5, %v2437_v29  ;;  %2011 = vmatmul.msk.f32.gmra.mxu1 %vm138_vm5, %v2439_v30 }
  0x30   :  { %2015 = vmatmul.msk.f32.gmra.mxu2 %vm138_vm5, %v2472_v41 }
  0x32   :  { %2019 = vmatmul.msk.f32.gmra.mxu3 %vm138_vm5, %v2480_v43 }
  0x36   :  { %2000 = vmatmul.msk.f32.gmra.mxu0 %vm138_vm5, %v76_v32  ;;  %2012 = vmatmul.msk.f32.gmra.mxu1 %vm138_vm5, %v2449_v33 }
  0x38   :  { %2016 = vmatmul.msk.f32.gmra.mxu2 %vm138_vm5, %v2484_v44 }
  0x3a   :  { %2020 = vmatmul.msk.f32.gmra.mxu3 %vm138_vm5, %v2492_v46 }
  0x3e   :  { %2001 = vmatmul.msk.f32.gmra.mxu0 %vm138_vm5, %v2462_v36 }
  0x46   :  { %2002 = vmatmul.msk.f32.gmra.mxu0 %vm138_vm5, %v2478_v42 }
  0x4e   :  { %2003 = vmatmul.msk.f32.gmra.mxu0 %vm138_vm5, %v2490_v45 }
  0x56   :  { %2004 = vmatmul.msk.f32.gmra.mxu0 %vm138_vm5, %v2498_v47 }
  0x5e   :  { %2005 = vmatmul.msk.f32.gmra.mxu0 %vm138_vm5, %v2502_v48 }
  0x66   :  { %2006 = vmatmul.msk.f32.gmra.mxu0 %vm138_vm5, %v2506_v49 }
  0x6e   :  { %2007 = vmatmul.msk.f32.gmra.mxu0 %vm138_vm5, %v2510_v50 }
  0x76   :  { %2008 = vmatmul.msk.f32.gmra.mxu0 %vm138_vm5, %v2514_v51 }
  0x8e   :  { %v2522_v60 = vpop.permute.xlu0 %305 }
  0x8f   :  { %vm310_vm8 = vcmp.eq.s32.totalorder %v2522_v60, 1 }
  0x96   :  { %v2529_v0 = vpop.permute.xlu0 %308 }
  0x97   :  { %vm311_vm9 = vcmp.eq.s32.totalorder %v2529_v0, 1 }
  0x9b   :  { %v228_v52 = vpop.f32.mrf.mxu0  ;;  %v264_v53 = vpop.f32.mrf.mxu1 }
  0x9c   :  { %v2552_v22 = vsel %vm310_vm8, %v228_v52, %v2407_v25  ;;  %v2134_v25 = vld [vmem:[%s3812_s5] ss:$0 sm:$0xff]  ;;  %v2602_v52 = vsel %vm127_vm0, 1.0, %v2257_v5 }
  0x9d   :  { %565 = vperm.xlu2 %2133, %v2134_v25  }
  0xa3   :  { %v231_v55 = vpop.f32.mrf.mxu0  ;;  %v267_v56 = vpop.f32.mrf.mxu1 }
  0xa4   :  { %v2542_v4 = vsel %vm310_vm8, %v231_v55, %v2429_v27  ;;  %v276_v21 = vpop.f32.mrf.mxu2  ;;  %v2574_v27 = vsel %vm311_vm9, %v267_v56, %v2431_v28 }
  0xa5   :  { %v288_v56 = vpop.f32.mrf.mxu3  ;;  %v2657_v58 = vsel %vm311_vm9, %v276_v21, %v2445_v31 }
  0xab   :  { %v234_v59 = vpop.f32.mrf.mxu0  ;;  %v270_v61 = vpop.f32.mrf.mxu1 }
  0xac   :  { %v2535_v2 = vsel %vm310_vm8, %v234_v59, %v2437_v29  ;;  %v2565_v20 = vsel %vm311_vm9, %v270_v61, %v2439_v30  ;;  %v2580_v29 = vsel %vm311_vm9, %v264_v53, %v2417_v26  ;;  %v2584_v30 = vsel %vm125_vm2, 1.0, %v2257_v5 }
  0xb3   :  { %v237_v62 = vpop.f32.mrf.mxu0  ;;  %v273_v3 = vpop.f32.mrf.mxu1 }
  0xb4   :  { %v2527_v63 = vsel %vm310_vm8, %v237_v62, %v76_v32  ;;  %v2557_v23 = vsel %vm311_vm9, %v273_v3, %v2449_v33  ;;  %v110_v32 = vld [vmem:[%s3812_s5 + $0xd] sm:$0x1]  ;;  %v279_v33 = vpop.f32.mrf.mxu2 }
  0xb5   :  { %362 = vmatpush.msrb.mxu1 %v2527_v63  ;;  %vm337_vm10 = vcmp.gt.f32.partialorder %v110_v32, 0.5 }
  0xb6   :  { %v525_v37 = vsel %vm337_vm10, 1, %v2255_v1 }
  0xb7   :  { %363 = vmatpush.msrb.mxu1 %v2535_v2  ;;  %v527_v26 = vperm.slane %v525_v37, 0 }
  0xb9   :  { %364 = vmatpush.msrb.mxu1 %v2542_v4  ;;  %532 = vperm.xlu1 %2132, %v527_v26  }
  0xbb   :  { %v240_v24 = vpop.f32.mrf.mxu0  ;;  %365 = vmatpush.msrb.mxu1 %v2552_v22 }
  0xbc   :  { %2021 = vmatmul.msk.f32.vlgmr.msrb.gmra.mxu1 %vm138_vm5, %v2547_v6  ;;  %v282_v40 = vpop.f32.mrf.mxu2 }
  0xbd   :  { %449 = vmatpush.msra.mxu1 %v2557_v23 }
  0xbf   :  { %450 = vmatpush.msra.mxu1 %v2565_v20 }
  0xc1   :  { %451 = vmatpush.msra.mxu1 %v2574_v27 }
  0xc3   :  { %v243_v28 = vpop.f32.mrf.mxu0  ;;  %452 = vmatpush.msra.mxu1 %v2580_v29 }
  0xc4   :  { %2022 = vmatmul.msk.f32.gmra.mxu1 %vm138_vm5, %v2584_v30  ;;  %v285_v7 = vpop.f32.mrf.mxu2  ;;  %v2621_v55 = vsel %vm310_vm8, %v243_v28, %v2478_v42  ;;  %v2648_v42 = vsel %vm311_vm9, %v279_v33, %v2456_v35  ;;  %v291_v35 = vpop.f32.mrf.mxu3 }
  0xcb   :  { %v246_v39 = vpop.f32.mrf.mxu0 }
  0xcc   :  { %2023 = vmatmul.msk.f32.gmra.mxu1 %vm138_vm5, %v2596_v15  ;;  %v2615_v8 = vsel %vm310_vm8, %v246_v39, %v2490_v45  ;;  %v2632_v45 = vsel %vm311_vm9, %v285_v7, %v2484_v44  ;;  %v2135_v44 = vld [vmem:[%s3812_s5 + $0x8] ss:$0 sm:$0xff]  ;;  %v294_v31 = vpop.f32.mrf.mxu3 }
  0xcd   :  { %569 = vperm.xlu2 %2133, %v2135_v44  }
  0xd3   :  { %v249_v53 = vpop.f32.mrf.mxu0 }
  0xd4   :  { %2024 = vmatmul.msk.f32.gmra.mxu1 %vm138_vm5, %v2602_v52  ;;  %v2609_v54 = vsel %vm310_vm8, %v249_v53, %v2498_v47  ;;  %v2627_v47 = vsel %vm310_vm8, %v240_v24, %v2462_v36  ;;  %v2642_v36 = vsel %vm311_vm9, %v282_v40, %v2472_v41  ;;  %v297_v21 = vpop.f32.mrf.mxu3  ;;  %v2745_v24 = vpop.permute.xlu1 %529 }
  0xd5   :  { %391 = vmatpush.msrb.mxu2 %v2609_v54  ;;  %vm534_vm11 = vcmp.eq.s32.totalorder %v2745_v24, 1 }
  0xd7   :  { %392 = vmatpush.msrb.mxu2 %v2615_v8 }
  0xd9   :  { %393 = vmatpush.msrb.mxu2 %v2621_v55 }
  0xdb   :  { %v252_v57 = vpop.f32.mrf.mxu0  ;;  %394 = vmatpush.msrb.mxu2 %v2627_v47 }
  0xdc   :  { %2025 = vmatmul.msk.f32.vlgmr.msrb.gmra.mxu2 %vm138_vm5, %v2547_v6  ;;  %2033 = vmatmul.msk.f32.vlgmr.msra.gmra.mxu1 %vm138_vm5, %v2547_v6 }
  0xdd   :  { %478 = vmatpush.msra.mxu2 %v2632_v45 }
  0xdf   :  { %479 = vmatpush.msra.mxu2 %v2642_v36 }
  0xe1   :  { %480 = vmatpush.msra.mxu2 %v2648_v42 }
  0xe3   :  { %v255_v41 = vpop.f32.mrf.mxu0  ;;  %481 = vmatpush.msra.mxu2 %v2657_v58 }
  0xe4   :  { %2026 = vmatmul.msk.f32.gmra.mxu2 %vm138_vm5, %v2584_v30  ;;  %2034 = vmatmul.msk.f32.gmra.mxu1 %vm138_vm5, %v2584_v30  ;;  %v2688_v5 = vsel %vm310_vm8, %v255_v41, %v2506_v49  ;;  %v2707_v49 = vsel %vm311_vm9, %v294_v31, %v2480_v43 }
  0xeb   :  { %v258_v59 = vpop.f32.mrf.mxu0 }
  0xec   :  { %2027 = vmatmul.msk.f32.gmra.mxu2 %vm138_vm5, %v2596_v15  ;;  %2035 = vmatmul.msk.f32.gmra.mxu1 %vm138_vm5, %v2596_v15  ;;  %v2682_v3 = vsel %vm310_vm8, %v258_v59, %v2510_v50  ;;  %v2697_v50 = vsel %vm311_vm9, %v297_v21, %v2492_v46  ;;  %v2713_v46 = vsel %vm311_vm9, %v291_v35, %v2467_v38  ;;  %v2136_v38 = vld [vmem:[%s3812_s5 + $0x1] ss:$0 sm:$0xff] }
  0xed   :  { %772 = vperm.xlu1 %2132, %v2136_v38  }
  0xf3   :  { %v261_v61 = vpop.f32.mrf.mxu0 }
  0xf4   :  { %2028 = vmatmul.msk.f32.gmra.mxu2 %vm138_vm5, %v2602_v52  ;;  %2036 = vmatmul.msk.f32.gmra.mxu1 %vm138_vm5, %v2602_v52  ;;  %v2676_v62 = vsel %vm310_vm8, %v261_v61, %v2514_v51  ;;  %v320_v51 = vsel %vm310_vm8, %v252_v57, %v2502_v48  ;;  %v2719_v48 = vsel %vm311_vm9, %v288_v56, %v2451_v34 }
  0xf5   :  { %420 = vmatpush.msrb.mxu3 %v2676_v62 }
  0xf7   :  { %421 = vmatpush.msrb.mxu3 %v2682_v3 }
  0xf9   :  { %422 = vmatpush.msrb.mxu3 %v2688_v5 }
  0xfb   :  { %423 = vmatpush.msrb.mxu3 %v320_v51 }
  0xfc   :  { %2029 = vmatmul.msk.f32.vlgmr.msrb.gmra.mxu3 %vm138_vm5, %v2547_v6  ;;  %2037 = vmatmul.msk.f32.vlgmr.msra.gmra.mxu2 %vm138_vm5, %v2547_v6 }
  0xfd   :  { %507 = vmatpush.msra.mxu3 %v2697_v50 }
  0xff   :  { %508 = vmatpush.msra.mxu3 %v2707_v49 }
 0x101   :  { %509 = vmatpush.msra.mxu3 %v2713_v46 }
 0x103   :  { %510 = vmatpush.msra.mxu3 %v2719_v48 }
 0x104   :  { %2030 = vmatmul.msk.f32.gmra.mxu3 %vm138_vm5, %v2584_v30  ;;  %2038 = vmatmul.msk.f32.gmra.mxu2 %vm138_vm5, %v2584_v30 }
 0x10c   :  { %2031 = vmatmul.msk.f32.gmra.mxu3 %vm138_vm5, %v2596_v15  ;;  %2039 = vmatmul.msk.f32.gmra.mxu2 %vm138_vm5, %v2596_v15 }
 0x114   :  { %2032 = vmatmul.msk.f32.gmra.mxu3 %vm138_vm5, %v2602_v52  ;;  %2040 = vmatmul.msk.f32.gmra.mxu2 %vm138_vm5, %v2602_v52 }
 0x11c   :  { %2041 = vmatmul.msk.f32.vlgmr.msra.gmra.mxu3 %vm138_vm5, %v2547_v6 }
 0x124   :  { %2042 = vmatmul.msk.f32.gmra.mxu3 %vm138_vm5, %v2584_v30  ;;  %v2754_v30 = vpop.permute.xlu2 %565 }
 0x12c   :  { %2043 = vmatmul.msk.f32.gmra.mxu3 %vm138_vm5, %v2596_v15 }
 0x134   :  { %2044 = vmatmul.msk.f32.gmra.mxu3 %vm138_vm5, %v2602_v52 }
 0x139   :  { %v367_v43 = vpop.f32.mrf.mxu1 }
 0x13a   :  { %v536_v25 = vsel %vm534_vm11, %v367_v43, %v2552_v22 }
 0x13b   :  { %v572_v37 = vmul.f32 %v2754_v30, %v536_v25 }
 0x13d   :  { %v596_v39 = vmax.f32 %v572_v37, 0.0 }
 0x13f   :  { %v2771_v44 = vmin.f32 %v596_v39, 1.0 }
 0x141   :  { %v370_v0 = vpop.f32.mrf.mxu1  ;;  %v644_v21 = vmul.f32 0.299, %v2771_v44 }
 0x142   :  { %v537_v40 = vsel %vm534_vm11, %v370_v0, %v2542_v4 }
 0x149   :  { %v373_v33 = vpop.f32.mrf.mxu1 }
 0x15f   :  { %v396_v34 = vpop.f32.mrf.mxu2 }
 0x160   :  { %v540_v6 = vsel %vm534_vm11, %v396_v34, %v2627_v47  ;;  %v573_v47 = vmul.f32 %v2754_v30, %v537_v40 }
 0x161   :  { %v576_v32 = vmul.f32 %v2754_v30, %v540_v6 }
 0x162   :  { %v597_v31 = vmax.f32 %v573_v47, 0.0  ;;  %v2805_v47 = vpop.permute.xlu1 %532 }
 0x163   :  { %v600_v26 = vmax.f32 %v576_v32, 0.0  ;;  %vm535_vm12 = vcmp.eq.s32.totalorder %v2805_v47, 1 }
 0x164   :  { %v2790_v6 = vmin.f32 %v597_v31, 1.0 }
 0x165   :  { %v2764_v52 = vmin.f32 %v600_v26, 1.0 }
 0x167   :  { %v399_v60 = vpop.f32.mrf.mxu2  ;;  %v652_v41 = vmul.f32 0.587, %v2764_v52 }
 0x168   :  { %v541_v15 = vsel %vm534_vm11, %v399_v60, %v2621_v55  ;;  %v376_v55 = vpop.f32.mrf.mxu1 }
 0x169   :  { %v577_v22 = vmul.f32 %v2754_v30, %v541_v15  ;;  %v660_v60 = vadd.f32 %v652_v41, %v644_v21 }
 0x16b   :  { %v601_v35 = vmax.f32 %v577_v22, 0.0 }
 0x16d   :  { %v2783_v38 = vmin.f32 %v601_v35, 1.0 }
 0x16f   :  { %v402_v28 = vpop.f32.mrf.mxu2 }
 0x170   :  { %v542_v59 = vsel %vm534_vm11, %v402_v28, %v2615_v8  ;;  %v454_v22 = vpop.f32.mrf.mxu1 }
 0x171   :  { %v578_v34 = vmul.f32 %v2754_v30, %v542_v59 }
 0x177   :  { %v405_v56 = vpop.f32.mrf.mxu2 }
 0x178   :  { %v543_v39 = vsel %vm534_vm11, %v405_v56, %v2609_v54 }
 0x179   :  { %v579_v41 = vmul.f32 %v2754_v30, %v543_v39 }
 0x17f   :  { %v425_v53 = vpop.f32.mrf.mxu3  ;;  %v483_v37 = vpop.f32.mrf.mxu2 }
 0x180   :  { %v544_v7 = vsel %vm534_vm11, %v425_v53, %v320_v51  ;;  %v538_v51 = vsel %vm534_vm11, %v373_v33, %v2535_v2  ;;  %v653_v2 = vmul.f32 0.587, %v2783_v38  ;;  %v602_v33 = vmax.f32 %v578_v34, 0.0 }
 0x181   :  { %v580_v57 = vmul.f32 %v2754_v30, %v544_v7  ;;  %v574_v25 = vmul.f32 %v2754_v30, %v538_v51  ;;  %v539_v7 = vsel %vm534_vm11, %v376_v55, %v2527_v63  ;;  %v603_v51 = vmax.f32 %v579_v41, 0.0 }
 0x182   :  { %v575_v31 = vmul.f32 %v2754_v30, %v539_v7 }
 0x183   :  { %v604_v4 = vmax.f32 %v580_v57, 0.0  ;;  %v598_v40 = vmax.f32 %v574_v25, 0.0  ;;  %v2807_v57 = vmin.f32 %v602_v33, 1.0  ;;  %v2832_v33 = vmin.f32 %v603_v51, 1.0 }
 0x185   :  { %v2777_v61 = vmin.f32 %v604_v4, 1.0  ;;  %v2814_v59 = vmin.f32 %v598_v40, 1.0  ;;  %v654_v21 = vmul.f32 0.587, %v2807_v57  ;;  %v655_v7 = vmul.f32 0.587, %v2832_v33 }
 0x187   :  { %v428_v43 = vpop.f32.mrf.mxu3  ;;  %v668_v0 = vmul.f32 0.114, %v2777_v61 }
 0x188   :  { %v545_v8 = vsel %vm534_vm11, %v428_v43, %v2688_v5  ;;  %v645_v5 = vmul.f32 0.299, %v2790_v6 }
 0x189   :  { %v581_v32 = vmul.f32 %v2754_v30, %v545_v8  ;;  %v676_v28 = vadd.f32 %v668_v0, %v660_v60  ;;  %v552_v60 = vsel %vm535_vm12, %v483_v37, %v2657_v58  ;;  %v599_v0 = vmax.f32 %v575_v31, 0.0  ;;  %v486_v8 = vpop.f32.mrf.mxu2 }
 0x18a   :  { %v661_v4 = vadd.f32 %v653_v2, %v645_v5  ;;  %v457_v2 = vpop.f32.mrf.mxu1 }
 0x18b   :  { %v605_v26 = vmax.f32 %v581_v32, 0.0  ;;  %v684_v15 = vsel %vm138_vm5, %v676_v28, 0.0  ;;  %v548_v32 = vsel %vm535_vm12, %v454_v22, %v2580_v29  ;;  %v2830_v28 = vpop.permute.xlu2 %569  ;;  %v2839_v5 = vmin.f32 %v599_v0, 1.0 }
 0x18c   :  { %685 = vadd.xlane.f32.xlu0 %v684_v15  ;;  %v584_v22 = vmul.f32 %v2830_v28, %v548_v32 }
 0x18d   :  { %v2800_v53 = vmin.f32 %v605_v26, 1.0  ;;  %v588_v26 = vmul.f32 %v2830_v28, %v552_v60 }
 0x18f   :  { %v431_v35 = vpop.f32.mrf.mxu3  ;;  %v669_v54 = vmul.f32 0.114, %v2800_v53  ;;  %v612_v41 = vmax.f32 %v588_v26, 0.0 }
 0x190   :  { %v546_v56 = vsel %vm534_vm11, %v431_v35, %v2682_v3  ;;  %v646_v3 = vmul.f32 0.299, %v2814_v59 }
 0x191   :  { %v582_v63 = vmul.f32 %v2754_v30, %v546_v56  ;;  %v677_v55 = vadd.f32 %v669_v54, %v661_v4  ;;  %v553_v54 = vsel %vm535_vm12, %v486_v8, %v2648_v42  ;;  %v608_v56 = vmax.f32 %v584_v22, 0.0 }
 0x192   :  { %v662_v58 = vadd.f32 %v654_v21, %v646_v3  ;;  %v2854_v31 = vmin.f32 %v612_v41, 1.0  ;;  %v460_v60 = vpop.f32.mrf.mxu1 }
 0x193   :  { %v606_v34 = vmax.f32 %v582_v63, 0.0  ;;  %v687_v43 = vsel %vm138_vm5, %v677_v55, 0.0  ;;  %v589_v63 = vmul.f32 %v2830_v28, %v553_v54  ;;  %v489_v55 = vpop.f32.mrf.mxu2 }
 0x194   :  { %688 = vadd.xlane.f32.xlu1 %v687_v43  ;;  %v656_v8 = vmul.f32 0.587, %v2854_v31 }
 0x195   :  { %v2825_v25 = vmin.f32 %v606_v34, 1.0  ;;  %v613_v32 = vmax.f32 %v589_v63, 0.0 }
 0x197   :  { %v434_v15 = vpop.f32.mrf.mxu3  ;;  %v670_v37 = vmul.f32 0.114, %v2825_v25 }
 0x198   :  { %v547_v39 = vsel %vm534_vm11, %v434_v15, %v2676_v62  ;;  %v647_v62 = vmul.f32 0.299, %v2839_v5  ;;  %v554_v15 = vsel %vm535_vm12, %v489_v55, %v2642_v36 }
 0x199   :  { %v583_v40 = vmul.f32 %v2754_v30, %v547_v39  ;;  %v678_v29 = vadd.f32 %v670_v37, %v662_v58  ;;  %v549_v30 = vsel %vm535_vm12, %v457_v2, %v2574_v27  ;;  %v2863_v27 = vmin.f32 %v608_v56, 1.0 }
 0x19a   :  { %v663_v51 = vadd.f32 %v655_v7, %v647_v62  ;;  %v585_v43 = vmul.f32 %v2830_v28, %v549_v30  ;;  %v550_v39 = vsel %vm535_vm12, %v460_v60, %v2565_v20  ;;  %v463_v56 = vpop.f32.mrf.mxu1 }
 0x19b   :  { %v607_v35 = vmax.f32 %v583_v40, 0.0  ;;  %v690_v4 = vsel %vm138_vm5, %v678_v29, 0.0  ;;  %v648_v37 = vmul.f32 0.299, %v2863_v27  ;;  %v2876_v40 = vmin.f32 %v613_v32, 1.0  ;;  %v492_v54 = vpop.f32.mrf.mxu2 }
 0x19c   :  { %691 = vadd.xlane.f32.xlu0 %v690_v4  ;;  %v590_v29 = vmul.f32 %v2830_v28, %v554_v15  ;;  %v586_v4 = vmul.f32 %v2830_v28, %v550_v39 }
 0x19d   :  { %v2849_v24 = vmin.f32 %v607_v35, 1.0  ;;  %v664_v7 = vadd.f32 %v656_v8, %v648_v37  ;;  %v657_v30 = vmul.f32 0.587, %v2876_v40 }
 0x19e   :  { %v614_v63 = vmax.f32 %v590_v29, 0.0 }
 0x19f   :  { %v512_v21 = vpop.f32.mrf.mxu3  ;;  %v671_v34 = vmul.f32 0.114, %v2849_v24 }
 0x1a0   :  { %v556_v42 = vsel %vm535_vm12, %v512_v21, %v2719_v48  ;;  %v609_v48 = vmax.f32 %v585_v43, 0.0  ;;  %v551_v43 = vsel %vm535_vm12, %v463_v56, %v2557_v23  ;;  %v2898_v60 = vmin.f32 %v614_v63, 1.0 }
 0x1a1   :  { %v592_v3 = vmul.f32 %v2830_v28, %v556_v42  ;;  %v679_v0 = vadd.f32 %v671_v34, %v663_v51  ;;  %v555_v51 = vsel %vm535_vm12, %v492_v54, %v2632_v45  ;;  %v610_v34 = vmax.f32 %v586_v4, 0.0 }
 0x1a2   :  { %v2883_v35 = vmin.f32 %v609_v48, 1.0  ;;  %v658_v23 = vmul.f32 0.587, %v2898_v60 }
 0x1a3   :  { %v616_v2 = vmax.f32 %v592_v3, 0.0  ;;  %v693_v26 = vsel %vm138_vm5, %v679_v0, 0.0  ;;  %v591_v3 = vmul.f32 %v2830_v28, %v555_v51 }
 0x1a4   :  { %694 = vadd.xlane.f32.xlu2 %v693_v26  ;;  %v587_v26 = vmul.f32 %v2830_v28, %v551_v43 }
 0x1a5   :  { %v2870_v58 = vmin.f32 %v616_v2, 1.0  ;;  %v2905_v2 = vmin.f32 %v610_v34, 1.0  ;;  %v615_v37 = vmax.f32 %v591_v3, 0.0  ;;  %v2137_v3 = vld [vmem:[%s3812_s5 + $0x9] ss:$0 sm:$0xff] }
 0x1a7   :  { %v515_v22 = vpop.f32.mrf.mxu3  ;;  %v672_v41 = vmul.f32 0.114, %v2870_v58 }
 0x1a8   :  { %v557_v36 = vsel %vm535_vm12, %v515_v22, %v2713_v46  ;;  %v649_v46 = vmul.f32 0.299, %v2883_v35  ;;  %v650_v22 = vmul.f32 0.299, %v2905_v2 }
 0x1a9   :  { %v593_v62 = vmul.f32 %v2830_v28, %v557_v36  ;;  %v680_v20 = vadd.f32 %v672_v41, %v664_v7  ;;  %v611_v7 = vmax.f32 %v587_v26, 0.0  ;;  %v2139_v26 = vld [vmem:[%s3812_s5 + $0x2] ss:$0 sm:$0xff] }
 0x1aa   :  { %v665_v8 = vadd.f32 %v657_v30, %v649_v46  ;;  %v666_v4 = vadd.f32 %v658_v23, %v650_v22  ;;  %v2258_v23 = vmov 32.0   ;;  %v773_v22 = vpop.permute.xlu1 %772 }
 0x1ab   :  { %v617_v55 = vmax.f32 %v593_v62, 0.0  ;;  %v696_v21 = vsel %vm138_vm5, %v680_v20, 0.0  ;;  %v2920_v20 = vmin.f32 %v611_v7, 1.0  ;;  %2140 = vrcp.f32 %v2258_v23 }
 0x1ac   :  { %697 = vadd.xlane.f32.xlu2 %v696_v21 }
 0x1ad   :  { %v2893_v42 = vmin.f32 %v617_v55, 1.0  ;;  %v651_v51 = vmul.f32 0.299, %v2920_v20 }
 0x1af   :  { %v518_v0 = vpop.f32.mrf.mxu3  ;;  %v673_v32 = vmul.f32 0.114, %v2893_v42 }
 0x1b0   :  { %v558_v45 = vsel %vm535_vm12, %v518_v0, %v2707_v49  ;;  %v2914_v49 = vmin.f32 %v615_v37, 1.0 }
 0x1b1   :  { %v594_v15 = vmul.f32 %v2830_v28, %v558_v45  ;;  %v681_v48 = vadd.f32 %v673_v32, %v665_v8  ;;  %v2138_v32 = vld [vmem:[%s3812_s5 + $0xa] ss:$0 sm:$0xff]  ;;  %v100_v45 = vld [vmem:[%s3812_s5 + $0x3] sm:$0x1]  ;;  %v2141_v37 = vpop.eup %2140 }
 0x1b2   :  { %v659_v63 = vmul.f32 0.587, %v2914_v49  ;;  %vm1087_vm14 = vcmp.gt.f32.partialorder %v100_v45, 0.5  ;;  %vm713_vm15 = vweird.f32 %v2141_v37 }
 0x1b3   :  { %v618_v39 = vmax.f32 %v594_v15, 0.0  ;;  %v699_v29 = vsel %vm138_vm5, %v681_v48, 0.0  ;;  %v1089_v15 = vsel %vm1087_vm14, 1, %v2255_v1 }
 0x1b4   :  { %700 = vadd.xlane.f32.xlu2 %v699_v29  ;;  %v667_v34 = vadd.f32 %v659_v63, %v651_v51  ;;  %v1091_v48 = vperm.slane %v1089_v15, 0 }
 0x1b5   :  { %v2912_v41 = vmin.f32 %v618_v39, 1.0  ;;  %v709_v39 = vmul.f32 32.0, %v2141_v37 }
 0x1b7   :  { %v521_v36 = vpop.f32.mrf.mxu3  ;;  %v674_v54 = vmul.f32 0.114, %v2912_v41  ;;  %v710_v29 = vsub.f32 1.0, %v709_v39 }
 0x1b8   :  { %v559_v62 = vsel %vm535_vm12, %v521_v36, %v2697_v50 }
 0x1b9   :  { %v595_v56 = vmul.f32 %v2830_v28, %v559_v62  ;;  %v682_v30 = vadd.f32 %v674_v54, %v666_v4  ;;  %v108_v28 = vld [vmem:[%s3812_s5 + $0xb] sm:$0x1]  ;;  %v711_v7 = vmul.f32 %v2141_v37, %v710_v29 }
 0x1ba   :  { %vm1088_vm13 = vcmp.gt.f32.partialorder %v108_v28, 0.5 }
 0x1bb   :  { %v619_v55 = vmax.f32 %v595_v56, 0.0  ;;  %v702_v21 = vsel %vm138_vm5, %v682_v30, 0.0  ;;  %v1090_v0 = vsel %vm1088_vm13, 1, %v2255_v1  ;;  %v712_v4 = vadd.f32 %v2141_v37, %v711_v7 }
 0x1bc   :  { %703 = vadd.xlane.f32.xlu1 %v702_v21  ;;  %v1092_v8 = vperm.slane %v1090_v0, 0 }
 0x1bd   :  { %v2926_v46 = vmin.f32 %v619_v55, 1.0  ;;  %v2947_v62 = vsel %vm713_vm15, %v2141_v37, %v712_v4 }
 0x1bf   :  { %v675_v43 = vmul.f32 0.114, %v2926_v46 }
 0x1c1   :  { %v683_v47 = vadd.f32 %v675_v43, %v667_v34 }
 0x1c3   :  { %v705_v50 = vsel %vm138_vm5, %v683_v47, 0.0 }
 0x1c4   :  { %706 = vadd.xlane.f32.xlu0 %v705_v50 }
 0x1cc   :  { %776 = vperm.xlu2 %2133, %v2137_v3  }
 0x1d4   :  { %1097 = vperm.xlu2 %2133, %v1092_v8  }
 0x1d5   :  { %948 = vperm.xlu1 %2132, %v2138_v32  }
 0x1d8   :  { %944 = vperm.xlu0 %2131, %v2139_v26  }
 0x1e0   :  { %1094 = vperm.xlu0 %2131, %v1091_v48  }
 0x1ff   :  { %v686_v36 = vpop.xlane.xlu0 %685 }
 0x200   :  { %v715_v1 = vmul.f32 %v2947_v62, %v686_v36 }
 0x207   :  { %v689_v54 = vpop.xlane.xlu1 %688 }
 0x208   :  { %v716_v30 = vmul.f32 %v2947_v62, %v689_v54 }
 0x20a   :  { %v723_v55 = vadd.f32 %v716_v30, %v715_v1 }
 0x20f   :  { %v692_v56 = vpop.xlane.xlu0 %691 }
 0x210   :  { %v717_v63 = vmul.f32 %v2947_v62, %v692_v56 }
 0x212   :  { %v724_v51 = vadd.f32 %v723_v55, %v717_v63 }
 0x217   :  { %v695_v21 = vpop.xlane.xlu2 %694 }
 0x218   :  { %v718_v34 = vmul.f32 %v2947_v62, %v695_v21 }
 0x21a   :  { %v725_v43 = vadd.f32 %v724_v51, %v718_v34 }
 0x21c   :  { %v726_v47 = vrot.slane %v725_v43, 4 }
 0x21e   :  { %v727_v50 = vadd.f32 %v726_v47, %v725_v43 }
 0x21f   :  { %v698_v0 = vpop.xlane.xlu2 %697 }
 0x220   :  { %v728_v28 = vrot.slane %v727_v50, 2 }
 0x222   :  { %v729_v3 = vadd.f32 %v728_v28, %v727_v50 }
 0x224   :  { %v730_v8 = vrot.slane %v729_v3, 1 }
 0x226   :  { %v731_v32 = vadd.f32 %v730_v8, %v729_v3 }
 0x227   :  { %v701_v7 = vpop.xlane.xlu2 %700 }
 0x228   :  { %v741_v45 = vmul.f32 %v731_v32, %v2947_v62 }
 0x22a   :  { %v743_v26 = vsub.f32 %v2771_v44, %v741_v45  ;;  %v744_v15 = vsub.f32 %v2790_v6, %v741_v45  ;;  %v745_v48 = vsub.f32 %v2814_v59, %v741_v45  ;;  %v746_v23 = vsub.f32 %v2839_v5, %v741_v45 }
 0x22b   :  { %v747_v37 = vsub.f32 %v2764_v52, %v741_v45  ;;  %v748_v39 = vsub.f32 %v2783_v38, %v741_v45  ;;  %v749_v29 = vsub.f32 %v2807_v57, %v741_v45  ;;  %v750_v36 = vsub.f32 %v2832_v33, %v741_v45 }
 0x22c   :  { %v751_v4 = vsub.f32 %v2777_v61, %v741_v45  ;;  %v752_v54 = vsub.f32 %v2800_v53, %v741_v45  ;;  %v753_v44 = vsub.f32 %v2825_v25, %v741_v45  ;;  %v754_v6 = vsub.f32 %v2849_v24, %v741_v45 }
 0x22d   :  { %v779_v59 = vmul.f32 %v773_v22, %v743_v26  ;;  %v780_v56 = vmul.f32 %v773_v22, %v744_v15  ;;  %v781_v5 = vmul.f32 %v773_v22, %v745_v48  ;;  %v782_v30 = vmul.f32 %v773_v22, %v746_v23 }
 0x22e   :  { %v783_v52 = vmul.f32 %v773_v22, %v747_v37  ;;  %v784_v1 = vmul.f32 %v773_v22, %v748_v39  ;;  %v785_v38 = vmul.f32 %v773_v22, %v749_v29  ;;  %v720_v57 = vmul.f32 %v2947_v62, %v701_v7 }
 0x22f   :  { %v704_v63 = vpop.xlane.xlu1 %703  ;;  %v786_v55 = vmul.f32 %v773_v22, %v750_v36  ;;  %v787_v33 = vmul.f32 %v773_v22, %v751_v4  ;;  %v788_v21 = vmul.f32 %v773_v22, %v752_v54  ;;  %v719_v61 = vmul.f32 %v2947_v62, %v698_v0 }
 0x230   :  { %v789_v53 = vmul.f32 %v773_v22, %v753_v44  ;;  %v803_v51 = vadd.f32 %v779_v59, %v741_v45  ;;  %v804_v25 = vadd.f32 %v780_v56, %v741_v45  ;;  %v805_v34 = vadd.f32 %v781_v5, %v741_v45 }
 0x231   :  { %v806_v24 = vadd.f32 %v782_v30, %v741_v45  ;;  %v807_v43 = vadd.f32 %v783_v52, %v741_v45  ;;  %v808_v47 = vadd.f32 %v784_v1, %v741_v45  ;;  %v721_v50 = vmul.f32 %v2947_v62, %v704_v63 }
 0x232   :  { %v790_v28 = vmul.f32 %v773_v22, %v754_v6  ;;  %v809_v3 = vadd.f32 %v785_v38, %v741_v45  ;;  %v810_v8 = vadd.f32 %v786_v55, %v741_v45  ;;  %v732_v32 = vadd.f32 %v720_v57, %v719_v61 }
 0x233   :  { %v811_v26 = vadd.f32 %v787_v33, %v741_v45  ;;  %v812_v15 = vadd.f32 %v788_v21, %v741_v45  ;;  %v827_v48 = vmax.f32 %v803_v51, 0.0  ;;  %v828_v23 = vmax.f32 %v804_v25, 0.0 }
 0x234   :  { %v829_v37 = vmax.f32 %v805_v34, 0.0  ;;  %v830_v39 = vmax.f32 %v806_v24, 0.0  ;;  %v831_v0 = vmax.f32 %v807_v43, 0.0  ;;  %v813_v29 = vadd.f32 %v789_v53, %v741_v45 }
 0x235   :  { %v832_v7 = vmax.f32 %v808_v47, 0.0  ;;  %v833_v36 = vmax.f32 %v809_v3, 0.0  ;;  %v834_v4 = vmax.f32 %v810_v8, 0.0  ;;  %v733_v54 = vadd.f32 %v732_v32, %v721_v50 }
 0x236   :  { %v814_v44 = vadd.f32 %v790_v28, %v741_v45  ;;  %v2969_v59 = vmin.f32 %v827_v48, 1.0  ;;  %v2971_v22 = vmin.f32 %v828_v23, 1.0  ;;  %v2973_v6 = vmin.f32 %v829_v37, 1.0 }
 0x237   :  { %v707_v56 = vpop.xlane.xlu0 %706  ;;  %v2975_v5 = vmin.f32 %v830_v39, 1.0  ;;  %v2977_v30 = vmin.f32 %v831_v0, 1.0  ;;  %v835_v1 = vmax.f32 %v811_v26, 0.0  ;;  %v2980_v38 = vmin.f32 %v832_v7, 1.0 }
 0x238   :  { %v722_v52 = vmul.f32 %v2947_v62, %v707_v56  ;;  %v2982_v57 = vmin.f32 %v833_v36, 1.0  ;;  %v836_v63 = vmax.f32 %v812_v15, 0.0  ;;  %v837_v45 = vmax.f32 %v813_v29, 0.0 }
 0x239   :  { %v2984_v55 = vmin.f32 %v834_v4, 1.0  ;;  %v838_v21 = vmax.f32 %v814_v44, 0.0  ;;  %v875_v61 = vmul.f32 0.299, %v2969_v59  ;;  %v876_v53 = vmul.f32 0.299, %v2971_v22 }
 0x23a   :  { %v734_v33 = vadd.f32 %v733_v54, %v722_v52  ;;  %v877_v51 = vmul.f32 0.299, %v2973_v6  ;;  %v878_v25 = vmul.f32 0.299, %v2975_v5  ;;  %v883_v34 = vmul.f32 0.587, %v2977_v30 }
 0x23b   :  { %v2991_v43 = vmin.f32 %v835_v1, 1.0  ;;  %v884_v47 = vmul.f32 0.587, %v2980_v38  ;;  %v885_v50 = vmul.f32 0.587, %v2982_v57  ;;  %v2995_v28 = vmin.f32 %v836_v63, 1.0 }
 0x23c   :  { %v735_v24 = vrot.slane %v734_v33, 4  ;;  %v2997_v3 = vmin.f32 %v837_v45, 1.0  ;;  %v886_v8 = vmul.f32 0.587, %v2984_v55  ;;  %v3000_v26 = vmin.f32 %v838_v21, 1.0 }
 0x23d   :  { %v891_v15 = vadd.f32 %v883_v34, %v875_v61  ;;  %v892_v48 = vadd.f32 %v884_v47, %v876_v53  ;;  %v893_v23 = vadd.f32 %v885_v50, %v877_v51  ;;  %v899_v0 = vmul.f32 0.114, %v2991_v43 }
 0x23e   :  { %v736_v32 = vadd.f32 %v735_v24, %v734_v33  ;;  %v894_v39 = vadd.f32 %v886_v8, %v878_v25  ;;  %v900_v29 = vmul.f32 0.114, %v2995_v28  ;;  %v901_v7 = vmul.f32 0.114, %v2997_v3 }
 0x23f   :  { %v902_v4 = vmul.f32 0.114, %v3000_v26  ;;  %v3006_v54 = vadd.f32 %v899_v0, %v891_v15 }
 0x240   :  { %v737_v37 = vrot.slane %v736_v32, 2  ;;  %v3008_v44 = vadd.f32 %v900_v29, %v892_v48  ;;  %v3010_v56 = vadd.f32 %v901_v7, %v893_v23  ;;  %v777_v7 = vpop.permute.xlu2 %776 }
 0x241   :  { %v3012_v1 = vadd.f32 %v902_v4, %v894_v39  ;;  %v915_v45 = vsub.f32 %v2969_v59, %v3006_v54 }
 0x242   :  { %v738_v36 = vadd.f32 %v737_v37, %v736_v32  ;;  %v916_v33 = vsub.f32 %v2971_v22, %v3008_v44  ;;  %v917_v21 = vsub.f32 %v2973_v6, %v3010_v56  ;;  %v3815_v6 = vsub.f32 %v2977_v30, %v3006_v54 }
 0x243   :  { %v918_v25 = vsub.f32 %v2975_v5, %v3012_v1  ;;  %v3817_v5 = vsub.f32 %v2982_v57, %v3010_v56  ;;  %v3818_v30 = vsub.f32 %v2984_v55, %v3012_v1 }
 0x244   :  { %v739_v52 = vrot.slane %v738_v36, 1 }
 0x246   :  { %v740_v63 = vadd.f32 %v739_v52, %v738_v36 }
 0x248   :  { %v742_v51 = vmul.f32 %v740_v63, %v2947_v62 }
 0x24a   :  { %v755_v32 = vsub.f32 %v2863_v27, %v742_v51  ;;  %v756_v15 = vsub.f32 %v2883_v35, %v742_v51  ;;  %v757_v48 = vsub.f32 %v2905_v2, %v742_v51  ;;  %v758_v23 = vsub.f32 %v2920_v20, %v742_v51 }
 0x24b   :  { %v759_v37 = vsub.f32 %v2854_v31, %v742_v51  ;;  %v760_v39 = vsub.f32 %v2876_v40, %v742_v51  ;;  %v761_v0 = vsub.f32 %v2898_v60, %v742_v51  ;;  %v762_v29 = vsub.f32 %v2914_v49, %v742_v51 }
 0x24c   :  { %v763_v36 = vsub.f32 %v2870_v58, %v742_v51  ;;  %v764_v4 = vsub.f32 %v2893_v42, %v742_v51  ;;  %v765_v27 = vsub.f32 %v2912_v41, %v742_v51  ;;  %v766_v35 = vsub.f32 %v2926_v46, %v742_v51 }
 0x24d   :  { %v791_v2 = vmul.f32 %v777_v7, %v755_v32  ;;  %v792_v52 = vmul.f32 %v777_v7, %v756_v15  ;;  %v793_v20 = vmul.f32 %v777_v7, %v757_v48  ;;  %v794_v63 = vmul.f32 %v777_v7, %v758_v23 }
 0x24e   :  { %v795_v31 = vmul.f32 %v777_v7, %v759_v37  ;;  %v796_v62 = vmul.f32 %v777_v7, %v760_v39  ;;  %v797_v40 = vmul.f32 %v777_v7, %v761_v0  ;;  %v798_v8 = vmul.f32 %v777_v7, %v762_v29 }
 0x24f   :  { %v799_v60 = vmul.f32 %v777_v7, %v763_v36  ;;  %v800_v50 = vmul.f32 %v777_v7, %v764_v4  ;;  %v801_v49 = vmul.f32 %v777_v7, %v765_v27  ;;  %v802_v53 = vmul.f32 %v777_v7, %v766_v35 }
 0x250   :  { %v815_v47 = vadd.f32 %v791_v2, %v742_v51  ;;  %v816_v58 = vadd.f32 %v792_v52, %v742_v51  ;;  %v817_v24 = vadd.f32 %v793_v20, %v742_v51  ;;  %v818_v42 = vadd.f32 %v794_v63, %v742_v51 }
 0x251   :  { %v819_v34 = vadd.f32 %v795_v31, %v742_v51  ;;  %v820_v41 = vadd.f32 %v796_v62, %v742_v51  ;;  %v821_v61 = vadd.f32 %v797_v40, %v742_v51  ;;  %v822_v46 = vadd.f32 %v798_v8, %v742_v51  ;;  %v3051_v40 = vpop.permute.xlu0 %944 }
 0x252   :  { %v823_v32 = vadd.f32 %v799_v60, %v742_v51  ;;  %v824_v15 = vadd.f32 %v800_v50, %v742_v51  ;;  %v825_v48 = vadd.f32 %v801_v49, %v742_v51  ;;  %v826_v23 = vadd.f32 %v802_v53, %v742_v51 }
 0x253   :  { %v839_v37 = vmax.f32 %v815_v47, 0.0  ;;  %v840_v39 = vmax.f32 %v816_v58, 0.0  ;;  %v841_v0 = vmax.f32 %v817_v24, 0.0  ;;  %v842_v29 = vmax.f32 %v818_v42, 0.0 }
 0x254   :  { %v843_v36 = vmax.f32 %v819_v34, 0.0  ;;  %v844_v4 = vmax.f32 %v820_v41, 0.0  ;;  %v845_v27 = vmax.f32 %v821_v61, 0.0  ;;  %v846_v7 = vmax.f32 %v822_v46, 0.0 }
 0x255   :  { %v847_v35 = vmax.f32 %v823_v32, 0.0  ;;  %v848_v2 = vmax.f32 %v824_v15, 0.0  ;;  %v849_v52 = vmax.f32 %v825_v48, 0.0  ;;  %v850_v20 = vmax.f32 %v826_v23, 0.0 }
 0x256   :  { %v863_v63 = vmin.f32 %v839_v37, 1.0  ;;  %v864_v62 = vmin.f32 %v840_v39, 1.0  ;;  %v865_v31 = vmin.f32 %v841_v0, 1.0  ;;  %v866_v8 = vmin.f32 %v842_v29, 1.0 }
 0x257   :  { %v867_v50 = vmin.f32 %v843_v36, 1.0  ;;  %v868_v53 = vmin.f32 %v844_v4, 1.0  ;;  %v869_v51 = vmin.f32 %v845_v27, 1.0  ;;  %v870_v47 = vmin.f32 %v846_v7, 1.0 }
 0x258   :  { %v871_v24 = vmin.f32 %v847_v35, 1.0  ;;  %v872_v60 = vmin.f32 %v848_v2, 1.0  ;;  %v873_v34 = vmin.f32 %v849_v52, 1.0  ;;  %v874_v49 = vmin.f32 %v850_v20, 1.0 }
 0x259   :  { %v879_v61 = vmul.f32 0.299, %v863_v63  ;;  %v880_v58 = vmul.f32 0.299, %v864_v62  ;;  %v881_v42 = vmul.f32 0.299, %v865_v31  ;;  %v3057_v41 = vmul.f32 %v3051_v40, %v915_v45 }
 0x25a   :  { %v882_v46 = vmul.f32 0.299, %v866_v8  ;;  %v887_v32 = vmul.f32 0.587, %v867_v50  ;;  %v888_v15 = vmul.f32 0.587, %v868_v53  ;;  %v3063_v48 = vmul.f32 %v3051_v40, %v916_v33 }
 0x25b   :  { %v889_v23 = vmul.f32 0.587, %v869_v51  ;;  %v890_v37 = vmul.f32 0.587, %v870_v47  ;;  %v903_v39 = vmul.f32 0.114, %v871_v24  ;;  %v3069_v59 = vmul.f32 %v3051_v40, %v917_v21 }
 0x25c   :  { %v895_v45 = vadd.f32 %v887_v32, %v879_v61  ;;  %v896_v0 = vadd.f32 %v888_v15, %v880_v58  ;;  %v904_v29 = vmul.f32 0.114, %v872_v60  ;;  %v905_v36 = vmul.f32 0.114, %v873_v34 }
 0x25d   :  { %v897_v4 = vadd.f32 %v889_v23, %v881_v42  ;;  %v898_v27 = vadd.f32 %v890_v37, %v882_v46  ;;  %v906_v7 = vmul.f32 0.114, %v874_v49  ;;  %v3075_v22 = vmul.f32 %v3051_v40, %v918_v25 }
 0x25e   :  { %v911_v33 = vadd.f32 %v903_v39, %v895_v45  ;;  %v912_v35 = vadd.f32 %v904_v29, %v896_v0  ;;  %v3081_v21 = vmul.f32 %v3051_v40, %v3815_v6  ;;  %v3816_v2 = vsub.f32 %v2980_v38, %v3008_v44  ;;  %v949_v45 = vpop.permute.xlu1 %948 }
 0x25f   :  { %v913_v20 = vadd.f32 %v905_v36, %v897_v4  ;;  %v914_v61 = vadd.f32 %v906_v7, %v898_v27  ;;  %v3093_v25 = vmul.f32 %v3051_v40, %v3817_v5  ;;  %v3099_v58 = vmul.f32 %v3051_v40, %v3818_v30 }
 0x260   :  { %v3087_v52 = vmul.f32 %v3051_v40, %v3816_v2  ;;  %v927_v42 = vsub.f32 %v863_v63, %v911_v33  ;;  %v928_v46 = vsub.f32 %v864_v62, %v912_v35  ;;  %v931_v38 = vsub.f32 %v867_v50, %v911_v33 }
 0x261   :  { %v932_v32 = vsub.f32 %v868_v53, %v912_v35  ;;  %v929_v15 = vsub.f32 %v865_v31, %v913_v20  ;;  %v930_v23 = vsub.f32 %v866_v8, %v914_v61  ;;  %v933_v37 = vsub.f32 %v869_v51, %v913_v20 }
 0x262   :  { %v934_v39 = vsub.f32 %v870_v47, %v914_v61  ;;  %v935_v0 = vsub.f32 %v871_v24, %v911_v33  ;;  %v936_v57 = vsub.f32 %v872_v60, %v912_v35  ;;  %v937_v29 = vsub.f32 %v873_v34, %v913_v20 }
 0x263   :  { %v938_v36 = vsub.f32 %v874_v49, %v914_v61  ;;  %v963_v4 = vmul.f32 %v949_v45, %v927_v42  ;;  %v964_v27 = vmul.f32 %v949_v45, %v928_v46  ;;  %v965_v7 = vmul.f32 %v949_v45, %v929_v15 }
 0x264   :  { %v966_v55 = vmul.f32 %v949_v45, %v930_v23  ;;  %v967_v6 = vmul.f32 %v949_v45, %v931_v38  ;;  %v968_v2 = vmul.f32 %v949_v45, %v932_v32  ;;  %v969_v5 = vmul.f32 %v949_v45, %v933_v37 }
 0x265   :  { %v970_v63 = vmul.f32 %v949_v45, %v934_v39  ;;  %v971_v62 = vmul.f32 %v949_v45, %v935_v0  ;;  %v972_v50 = vmul.f32 %v949_v45, %v936_v57  ;;  %v973_v53 = vmul.f32 %v949_v45, %v937_v29  ;;  %v3101_v0 = vpop.permute.xlu2 %1097 }
 0x266   :  { %v974_v31 = vmul.f32 %v949_v45, %v938_v36  ;;  %v987_v8 = vadd.f32 %v963_v4, %v911_v33  ;;  %v988_v51 = vadd.f32 %v964_v27, %v912_v35  ;;  %v989_v47 = vadd.f32 %v965_v7, %v913_v20 }
 0x267   :  { %v990_v30 = vadd.f32 %v966_v55, %v914_v61  ;;  %v991_v24 = vadd.f32 %v967_v6, %v911_v33  ;;  %v992_v60 = vadd.f32 %v968_v2, %v912_v35  ;;  %v993_v34 = vadd.f32 %v969_v5, %v913_v20 }
 0x268   :  { %v994_v49 = vadd.f32 %v970_v63, %v914_v61  ;;  %v995_v42 = vadd.f32 %v971_v62, %v911_v33  ;;  %v996_v46 = vadd.f32 %v972_v50, %v912_v35  ;;  %v997_v15 = vadd.f32 %v973_v53, %v913_v20 }
 0x269   :  { %v998_v23 = vadd.f32 %v974_v31, %v914_v61  ;;  %v1011_v38 = vmax.f32 %v987_v8, 0.0  ;;  %v1012_v32 = vmax.f32 %v988_v51, 0.0  ;;  %v1013_v37 = vmax.f32 %v989_v47, 0.0 }
 0x26a   :  { %v1014_v39 = vmax.f32 %v990_v30, 0.0  ;;  %v1015_v57 = vmax.f32 %v991_v24, 0.0  ;;  %v1016_v45 = vmax.f32 %v992_v60, 0.0  ;;  %v1017_v29 = vmax.f32 %v993_v34, 0.0 }
 0x26b   :  { %v1018_v36 = vmax.f32 %v994_v49, 0.0  ;;  %v1019_v4 = vmax.f32 %v995_v42, 0.0  ;;  %v1020_v27 = vmax.f32 %v996_v46, 0.0  ;;  %v1021_v7 = vmax.f32 %v997_v15, 0.0 }
 0x26c   :  { %v1022_v55 = vmax.f32 %v998_v23, 0.0  ;;  %v1035_v6 = vmin.f32 %v1011_v38, 1.0  ;;  %v1036_v2 = vmin.f32 %v1012_v32, 1.0  ;;  %v1037_v33 = vmin.f32 %v1013_v37, 1.0 }
 0x26d   :  { %v1038_v35 = vmin.f32 %v1014_v39, 1.0  ;;  %vm1100_vm0 = vcmp.eq.s32.totalorder %v3101_v0, 1  ;;  %v1039_v20 = vmin.f32 %v1015_v57, 1.0  ;;  %v1040_v61 = vmin.f32 %v1016_v45, 1.0 }
 0x26e   :  { %v1041_v5 = vmin.f32 %v1017_v29, 1.0  ;;  %v1042_v63 = vmin.f32 %v1018_v36, 1.0  ;;  %v1043_v62 = vmin.f32 %v1019_v4, 1.0  ;;  %v1044_v50 = vmin.f32 %v1020_v27, 1.0 }
 0x26f   :  { %v1045_v53 = vmin.f32 %v1021_v7, 1.0  ;;  %v1046_v31 = vmin.f32 %v1022_v55, 1.0  ;;  %v1051_v8 = vmul.f32 0.299, %v1035_v6  ;;  %v1052_v51 = vmul.f32 0.299, %v1036_v2 }
 0x270   :  { %v1053_v47 = vmul.f32 0.299, %v1037_v33  ;;  %v3819_v30 = vsub.f32 %v2991_v43, %v3006_v54  ;;  %v1054_v60 = vmul.f32 0.299, %v1038_v35  ;;  %v1059_v34 = vmul.f32 0.587, %v1039_v20 }
 0x271   :  { %v1060_v49 = vmul.f32 0.587, %v1040_v61  ;;  %v3820_v42 = vsub.f32 %v2995_v28, %v3008_v44  ;;  %v1061_v15 = vmul.f32 0.587, %v1041_v5  ;;  %v1062_v23 = vmul.f32 0.587, %v1042_v63 }
 0x272   :  { %v959_v24 = vmul.f32 %v3051_v40, %v3819_v30  ;;  %v1075_v38 = vmul.f32 0.114, %v1043_v62  ;;  %v3821_v32 = vsub.f32 %v2997_v3, %v3010_v56  ;;  %v1067_v39 = vadd.f32 %v1059_v34, %v1051_v8 }
 0x273   :  { %v960_v46 = vmul.f32 %v3051_v40, %v3820_v42  ;;  %v1068_v43 = vadd.f32 %v1060_v49, %v1052_v51  ;;  %v1076_v57 = vmul.f32 0.114, %v1044_v50  ;;  %v1077_v45 = vmul.f32 0.114, %v1045_v53 }
 0x274   :  { %v961_v37 = vmul.f32 %v3051_v40, %v3821_v32  ;;  %v1069_v29 = vadd.f32 %v1061_v15, %v1053_v47  ;;  %v1070_v36 = vadd.f32 %v1062_v23, %v1054_v60  ;;  %v1078_v4 = vmul.f32 0.114, %v1046_v31 }
 0x275   :  { %v3822_v28 = vsub.f32 %v3000_v26, %v3012_v1  ;;  %v1083_v7 = vadd.f32 %v1075_v38, %v1067_v39  ;;  %v1084_v55 = vadd.f32 %v1076_v57, %v1068_v43  ;;  %v975_v30 = vadd.f32 %v3057_v41, %v3006_v54 }
 0x276   :  { %v976_v3 = vadd.f32 %v3063_v48, %v3008_v44  ;;  %v1085_v8 = vadd.f32 %v1077_v45, %v1069_v29  ;;  %v1086_v51 = vadd.f32 %v1078_v4, %v1070_v36  ;;  %v977_v47 = vadd.f32 %v3069_v59, %v3010_v56 }
 0x277   :  { %v962_v27 = vmul.f32 %v3051_v40, %v3822_v28  ;;  %v978_v60 = vadd.f32 %v3075_v22, %v3012_v1  ;;  %v3130_v26 = vsel %vm1100_vm0, %v1083_v7, %v1035_v6  ;;  %v3134_v40 = vsel %vm1100_vm0, %v1084_v55, %v1036_v2 }
 0x278   :  { %v3138_v41 = vsel %vm1100_vm0, %v1083_v7, %v1039_v20  ;;  %v3142_v48 = vsel %vm1100_vm0, %v1084_v55, %v1040_v61  ;;  %v3146_v59 = vsel %vm1100_vm0, %v1085_v8, %v1037_v33  ;;  %v3150_v22 = vsel %vm1100_vm0, %v1086_v51, %v1038_v35 }
 0x279   :  { %v3154_v6 = vsel %vm1100_vm0, %v1085_v8, %v1041_v5  ;;  %v3158_v2 = vsel %vm1100_vm0, %v1086_v51, %v1042_v63  ;;  %v3162_v20 = vsel %vm1100_vm0, %v1083_v7, %v1043_v62  ;;  %v3166_v33 = vsel %vm1100_vm0, %v1084_v55, %v1044_v50 }
 0x27a   :  { %v3170_v35 = vsel %vm1100_vm0, %v1085_v8, %v1045_v53  ;;  %v3174_v61 = vsel %vm1100_vm0, %v1086_v51, %v1046_v31  ;;  %v979_v5 = vadd.f32 %v3081_v21, %v3006_v54  ;;  %v980_v63 = vadd.f32 %v3087_v52, %v3008_v44 }
 0x27b   :  { %v981_v62 = vadd.f32 %v3093_v25, %v3010_v56  ;;  %v982_v50 = vadd.f32 %v3099_v58, %v3012_v1  ;;  %v983_v34 = vadd.f32 %v959_v24, %v3006_v54  ;;  %v984_v53 = vadd.f32 %v960_v46, %v3008_v44 }
 0x27c   :  { %v985_v0 = vadd.f32 %v961_v37, %v3010_v56  ;;  %v986_v31 = vadd.f32 %v962_v27, %v3012_v1  ;;  %v999_v49 = vmax.f32 %v975_v30, 0.0  ;;  %v1000_v42 = vmax.f32 %v976_v3, 0.0 }
 0x27d   :  { %v1001_v21 = vmax.f32 %v977_v47, 0.0  ;;  %v1002_v15 = vmax.f32 %v978_v60, 0.0  ;;  %v1003_v23 = vmax.f32 %v979_v5, 0.0  ;;  %v1004_v52 = vmax.f32 %v980_v63, 0.0 }
 0x27e   :  { %v1005_v38 = vmax.f32 %v981_v62, 0.0  ;;  %v1006_v32 = vmax.f32 %v982_v50, 0.0  ;;  %v1007_v25 = vmax.f32 %v983_v34, 0.0  ;;  %v1008_v39 = vmax.f32 %v984_v53, 0.0  ;;  %v1095_v62 = vpop.permute.xlu0 %1094 }
 0x27f   :  { %v1009_v43 = vmax.f32 %v985_v0, 0.0  ;;  %v1010_v58 = vmax.f32 %v986_v31, 0.0  ;;  %v1023_v57 = vmin.f32 %v999_v49, 1.0  ;;  %v1024_v54 = vmin.f32 %v1000_v42, 1.0 }
 0x280   :  { %v1025_v24 = vmin.f32 %v1001_v21, 1.0  ;;  %v1026_v44 = vmin.f32 %v1002_v15, 1.0  ;;  %v1027_v46 = vmin.f32 %v1003_v23, 1.0  ;;  %v1028_v56 = vmin.f32 %v1004_v52, 1.0 }
 0x281   :  { %v1029_v37 = vmin.f32 %v1005_v38, 1.0  ;;  %v1030_v1 = vmin.f32 %v1006_v32, 1.0  ;;  %v1031_v45 = vmin.f32 %v1007_v25, 1.0  ;;  %v1032_v29 = vmin.f32 %v1008_v39, 1.0 }
 0x282   :  { %v1033_v36 = vmin.f32 %v1009_v43, 1.0  ;;  %v1034_v4 = vmin.f32 %v1010_v58, 1.0  ;;  %v1047_v28 = vmul.f32 0.299, %v1023_v57  ;;  %v1048_v27 = vmul.f32 0.299, %v1024_v54 }
 0x283   :  { %v1049_v7 = vmul.f32 0.299, %v1025_v24  ;;  %v1050_v55 = vmul.f32 0.299, %v1026_v44  ;;  %v1055_v30 = vmul.f32 0.587, %v1027_v46 }
 0x284   :  { %v1056_v3 = vmul.f32 0.587, %v1028_v56  ;;  %v1057_v8 = vmul.f32 0.587, %v1029_v37  ;;  %v1058_v51 = vmul.f32 0.587, %v1030_v1 }
 0x285   :  { %v1063_v47 = vadd.f32 %v1055_v30, %v1047_v28  ;;  %v1071_v5 = vmul.f32 0.114, %v1031_v45  ;;  %v1072_v63 = vmul.f32 0.114, %v1032_v29  ;;  %v1073_v53 = vmul.f32 0.114, %v1033_v36 }
 0x286   :  { %v1064_v60 = vadd.f32 %v1056_v3, %v1048_v27  ;;  %v1065_v50 = vadd.f32 %v1057_v8, %v1049_v7  ;;  %v1066_v34 = vadd.f32 %v1058_v51, %v1050_v55  ;;  %v1074_v0 = vmul.f32 0.114, %v1034_v4 }
 0x287   :  { %v1079_v31 = vadd.f32 %v1071_v5, %v1063_v47  ;;  %vm1099_vm1 = vcmp.eq.s32.totalorder %v1095_v62, 1 }
 0x288   :  { %v1080_v49 = vadd.f32 %v1072_v63, %v1064_v60  ;;  %v1081_v42 = vadd.f32 %v1073_v53, %v1065_v50  ;;  %v1082_v21 = vadd.f32 %v1074_v0, %v1066_v34  ;;  %1135 = sbr.rel (%p2045_p0) target bundleno = 1080 (0x438), region = 41 }
 0x289   :  { %v3188_v15 = vsel %vm1099_vm1, %v1079_v31, %v1023_v57  ;;  %v3192_v52 = vsel %vm1099_vm1, %v1079_v31, %v1027_v46  ;;  %v3204_v58 = vsel %vm1099_vm1, %v1079_v31, %v1031_v45 }
 0x28a   :  { %v3190_v23 = vsel %vm1099_vm1, %v1080_v49, %v1024_v54  ;;  %v3194_v38 = vsel %vm1099_vm1, %v1080_v49, %v1028_v56  ;;  %v3196_v32 = vsel %vm1099_vm1, %v1081_v42, %v1025_v24  ;;  %v3198_v25 = vsel %vm1099_vm1, %v1082_v21, %v1026_v44 }
 0x28b   :  { %v3200_v39 = vsel %vm1099_vm1, %v1081_v42, %v1029_v37  ;;  %v3202_v43 = vsel %vm1099_vm1, %v1082_v21, %v1030_v1  ;;  %v3206_v28 = vsel %vm1099_vm1, %v1080_v49, %v1032_v29  ;;  %v3208_v57 = vsel %vm1099_vm1, %v1081_v42, %v1033_v36 }
 0x28c   :  { %v3210_v54 = vsel %vm1099_vm1, %v1082_v21, %v1034_v4 }
 0x28d   :  { %v1139_v24 = vld [vmem:[#allocation4 + $0x18] sm:$0xff]  ;;  %v1138_v44 = vld [vmem:[#allocation4 + $0x10] sm:$0xff]  ;;  %v1137_v46 = vld [vmem:[#allocation4 + $0x8] sm:$0xff]  ;;  %vm1491_vm2 = vcmp.gt.f32.partialorder %v2330_v9, 0.5  ;;  %v2259_v50 = vmov 0   ;;  %vm1601_vm3 = vcmp.gt.f32.partialorder %v2335_v10, 0.5 }
 0x28e   :  { %1224 = vmatpush.msra.mxu0 %v1139_v24  ;;  %2108 = vmatpush.msra.mxu2 %v1139_v24  ;;  %v1136_v56 = vld [vmem:[#allocation4] sm:$0xff]  ;;  %v3267_v47 = vld [vmem:[#allocation7 + $0x8] sm:$0xff]  ;;  %v3271_v62 = vld [vmem:[#allocation7 + $0x10] sm:$0xff]  ;;  %v1493_v34 = vsel %vm1491_vm2, 1, %v2259_v50  ;;  %v1603_v9 = vsel %vm1601_vm3, 1, %v2259_v50  ;;  %vm1492_vm4 = vcmp.gt.f32.partialorder %v2340_v11, 0.5 }
 0x28f   :  { %2109 = vmatpush.msra.mxu3 %v1139_v24  ;;  %2107 = vmatpush.msra.mxu1 %v1139_v24  ;;  %v3263_v30 = vld [vmem:[#allocation7] sm:$0xff]  ;;  %v1495_v0 = vperm.slane %v1493_v34, 0  ;;  %v1605_v42 = vperm.slane %v1603_v9, 0  ;;  %v1494_v21 = vsel %vm1492_vm4, 1, %v2259_v50  ;;  %v1304_v24 = vld [vmem:[#allocation7 + $0x18] sm:$0xff]  ;;  %vm1602_vm6 = vcmp.gt.f32.partialorder %v2345_v12, 0.5 }
 0x290   :  { %1225 = vmatpush.msra.mxu0 %v1138_v44  ;;  %2111 = vmatpush.msra.mxu2 %v1138_v44  ;;  %v1644_v11 = vperm.slane %v2362_v16, 0 }
 0x291   :  { %2112 = vmatpush.msra.mxu3 %v1138_v44  ;;  %2110 = vmatpush.msra.mxu1 %v1138_v44  ;;  %v1496_v44 = vperm.slane %v1494_v21, 0 }
 0x292   :  { %1226 = vmatpush.msra.mxu0 %v1137_v46  ;;  %2114 = vmatpush.msra.mxu2 %v1137_v46 }
 0x293   :  { %2115 = vmatpush.msra.mxu3 %v1137_v46  ;;  %2113 = vmatpush.msra.mxu1 %v1137_v46 }
 0x294   :  { %1227 = vmatpush.msra.mxu0 %v1136_v56  ;;  %2117 = vmatpush.msra.mxu2 %v1136_v56 }
 0x295   :  { %2046 = vmatmul.msk.f32.vlgmr.msra.gmra.mxu0 %vm138_vm5, %v3188_v15  ;;  %2062 = vmatmul.msk.f32.vlgmr.msra.gmra.mxu2 %vm138_vm5, %v3138_v41 }
 0x296   :  { %2118 = vmatpush.msra.mxu3 %v1136_v56  ;;  %2116 = vmatpush.msra.mxu1 %v1136_v56 }
 0x297   :  { %2066 = vmatmul.msk.f32.vlgmr.msra.gmra.mxu3 %vm138_vm5, %v3162_v20  ;;  %2058 = vmatmul.msk.f32.vlgmr.msra.gmra.mxu1 %vm138_vm5, %v3130_v26 }
 0x298   :  { %2142 = vset.pattern.permute.xlu0 %v2259_v50  ;;  %2143 = vset.pattern.permute.xlu1 %v2259_v50 }
 0x299   :  { %2144 = vset.pattern.permute.xlu2 %v2259_v50  ;;  %1498 = vperm.xlu0 %2142, %v1495_v0  }
 0x29a   :  { %1608 = vperm.xlu1 %2143, %v1605_v42  }
 0x29d   :  { %2047 = vmatmul.msk.f32.gmra.mxu0 %vm138_vm5, %v3190_v23  ;;  %2063 = vmatmul.msk.f32.gmra.mxu2 %vm138_vm5, %v3142_v48 }
 0x29f   :  { %2067 = vmatmul.msk.f32.gmra.mxu3 %vm138_vm5, %v3166_v33  ;;  %2059 = vmatmul.msk.f32.gmra.mxu1 %vm138_vm5, %v3134_v40 }
 0x2a1   :  { %1501 = vperm.xlu0 %2142, %v1496_v44  }
 0x2a5   :  { %2048 = vmatmul.msk.f32.gmra.mxu0 %vm138_vm5, %v3196_v32  ;;  %2064 = vmatmul.msk.f32.gmra.mxu2 %vm138_vm5, %v3154_v6 }
 0x2a7   :  { %2068 = vmatmul.msk.f32.gmra.mxu3 %vm138_vm5, %v3170_v35  ;;  %2060 = vmatmul.msk.f32.gmra.mxu1 %vm138_vm5, %v3146_v59 }
 0x2a9   :  { %1654 = vperm.xlu0 %2142, %v1644_v11  }
 0x2ad   :  { %2049 = vmatmul.msk.f32.gmra.mxu0 %vm138_vm5, %v3198_v25  ;;  %2065 = vmatmul.msk.f32.gmra.mxu2 %vm138_vm5, %v3158_v2 }
 0x2af   :  { %2069 = vmatmul.msk.f32.gmra.mxu3 %vm138_vm5, %v3174_v61  ;;  %2061 = vmatmul.msk.f32.gmra.mxu1 %vm138_vm5, %v3150_v22 }
 0x2b5   :  { %2050 = vmatmul.msk.f32.gmra.mxu0 %vm138_vm5, %v3192_v52 }
 0x2bd   :  { %2051 = vmatmul.msk.f32.gmra.mxu0 %vm138_vm5, %v3194_v38 }
 0x2c5   :  { %2052 = vmatmul.msk.f32.gmra.mxu0 %vm138_vm5, %v3200_v39 }
 0x2cd   :  { %2053 = vmatmul.msk.f32.gmra.mxu0 %vm138_vm5, %v3202_v43 }
 0x2d5   :  { %2054 = vmatmul.msk.f32.gmra.mxu0 %vm138_vm5, %v3204_v58 }
 0x2dd   :  { %2055 = vmatmul.msk.f32.gmra.mxu0 %vm138_vm5, %v3206_v28 }
 0x2e5   :  { %2056 = vmatmul.msk.f32.gmra.mxu0 %vm138_vm5, %v3208_v57 }
 0x2ed   :  { %2057 = vmatmul.msk.f32.gmra.mxu0 %vm138_vm5, %v3210_v54 }
 0x312   :  { %v1229_v37 = vpop.f32.mrf.mxu0 }
 0x314   :  { %v1265_v7 = vpop.f32.mrf.mxu1 }
 0x318   :  { %v1277_v4 = vpop.f32.mrf.mxu2 }
 0x31a   :  { %v1232_v1 = vpop.f32.mrf.mxu0  ;;  %v1289_v53 = vpop.f32.mrf.mxu3 }
 0x31c   :  { %v1268_v8 = vpop.f32.mrf.mxu1 }
 0x320   :  { %v1280_v55 = vpop.f32.mrf.mxu2 }
 0x322   :  { %v1235_v45 = vpop.f32.mrf.mxu0  ;;  %v1292_v56 = vpop.f32.mrf.mxu3 }
 0x324   :  { %v1271_v5 = vpop.f32.mrf.mxu1 }
 0x328   :  { %v1283_v51 = vpop.f32.mrf.mxu2 }
 0x32a   :  { %v1238_v29 = vpop.f32.mrf.mxu0 }
 0x32b   :  { %1329 = vmatpush.msrb.mxu1 %v1238_v29  ;;  %v1295_v29 = vpop.f32.mrf.mxu3 }
 0x32c   :  { %v1274_v49 = vpop.f32.mrf.mxu1 }
 0x32d   :  { %1330 = vmatpush.msrb.mxu1 %v1235_v45 }
 0x32f   :  { %1331 = vmatpush.msrb.mxu1 %v1232_v1 }
 0x330   :  { %v1286_v63 = vpop.f32.mrf.mxu2 }
 0x331   :  { %1332 = vmatpush.msrb.mxu1 %v1229_v37  ;;  %v1604_v37 = vsel %vm1602_vm6, 1, %v2259_v50  ;;  %v3325_v50 = vpop.permute.xlu0 %1498 }
 0x332   :  { %v1241_v36 = vpop.f32.mrf.mxu0  ;;  %2070 = vmatmul.msk.f32.vlgmr.msrb.gmra.mxu1 %vm138_vm5, %v3263_v30  ;;  %v1606_v1 = vperm.slane %v1604_v37, 0  ;;  %vm1503_vm7 = vcmp.eq.s32.totalorder %v3325_v50, 1 }
 0x333   :  { %1416 = vmatpush.msra.mxu1 %v1274_v49 }
 0x334   :  { %1611 = vperm.xlu1 %2143, %v1606_v1  }
 0x335   :  { %1417 = vmatpush.msra.mxu1 %v1271_v5  ;;  %v3323_v5 = vpop.permute.xlu1 %1608 }
 0x336   :  { %vm1613_vm9 = vcmp.eq.s32.totalorder %v3323_v5, 1 }
 0x337   :  { %1418 = vmatpush.msra.mxu1 %v1268_v8  ;;  %v1685_v8 = vperm.slane %v2372_v18, 0 }
 0x339   :  { %1419 = vmatpush.msra.mxu1 %v1265_v7  ;;  %v1642_v7 = vperm.slane %v2350_v13, 0 }
 0x33a   :  { %v1244_v27 = vpop.f32.mrf.mxu0  ;;  %2071 = vmatmul.msk.f32.gmra.mxu1 %vm138_vm5, %v3267_v47 }
 0x33b   :  { %1646 = vperm.xlu2 %2144, %v1642_v7  }
 0x342   :  { %v1247_v3 = vpop.f32.mrf.mxu0  ;;  %2072 = vmatmul.msk.f32.gmra.mxu1 %vm138_vm5, %v3271_v62 }
 0x34a   :  { %v1250_v60 = vpop.f32.mrf.mxu0  ;;  %2073 = vmatmul.msk.f32.gmra.mxu1 %vm138_vm5, %v1304_v24 }
 0x34b   :  { %1358 = vmatpush.msrb.mxu2 %v1250_v60 }
 0x34d   :  { %1359 = vmatpush.msrb.mxu2 %v1247_v3  ;;  %v1643_v3 = vperm.slane %v2355_v14, 0 }
 0x34f   :  { %1360 = vmatpush.msrb.mxu2 %v1244_v27  ;;  %1650 = vperm.xlu2 %2144, %v1643_v3  }
 0x351   :  { %1361 = vmatpush.msrb.mxu2 %v1241_v36  ;;  %v1684_v36 = vperm.slane %v2367_v17, 0 }
 0x352   :  { %v1253_v31 = vpop.f32.mrf.mxu0  ;;  %2074 = vmatmul.msk.f32.vlgmr.msrb.gmra.mxu2 %vm138_vm5, %v3263_v30  ;;  %2082 = vmatmul.msk.f32.vlgmr.msra.gmra.mxu1 %vm138_vm5, %v3263_v30 }
 0x353   :  { %1445 = vmatpush.msra.mxu2 %v1286_v63  ;;  %1688 = vperm.xlu1 %2143, %v1684_v36  }
 0x355   :  { %1446 = vmatpush.msra.mxu2 %v1283_v51 }
 0x357   :  { %1447 = vmatpush.msra.mxu2 %v1280_v55  ;;  %v1298_v55 = vpop.f32.mrf.mxu3  ;;  %1692 = vperm.xlu2 %2144, %v1685_v8  }
 0x359   :  { %1448 = vmatpush.msra.mxu2 %v1277_v4  ;;  %v1686_v4 = vperm.slane %v2377_v19, 0 }
 0x35a   :  { %v1256_v46 = vpop.f32.mrf.mxu0  ;;  %2075 = vmatmul.msk.f32.gmra.mxu2 %vm138_vm5, %v3267_v47  ;;  %2083 = vmatmul.msk.f32.gmra.mxu1 %vm138_vm5, %v3267_v47 }
 0x35b   :  { %1696 = vperm.xlu0 %2142, %v1686_v4  }
 0x362   :  { %v1259_v45 = vpop.f32.mrf.mxu0  ;;  %2076 = vmatmul.msk.f32.gmra.mxu2 %vm138_vm5, %v3271_v62  ;;  %2084 = vmatmul.msk.f32.gmra.mxu1 %vm138_vm5, %v3271_v62 }
 0x36a   :  { %v1262_v27 = vpop.f32.mrf.mxu0  ;;  %2077 = vmatmul.msk.f32.gmra.mxu2 %vm138_vm5, %v1304_v24  ;;  %2085 = vmatmul.msk.f32.gmra.mxu1 %vm138_vm5, %v1304_v24 }
 0x36b   :  { %1387 = vmatpush.msrb.mxu3 %v1262_v27 }
 0x36d   :  { %1388 = vmatpush.msrb.mxu3 %v1259_v45 }
 0x36f   :  { %1389 = vmatpush.msrb.mxu3 %v1256_v46 }
 0x371   :  { %1390 = vmatpush.msrb.mxu3 %v1253_v31 }
 0x372   :  { %2078 = vmatmul.msk.f32.vlgmr.msrb.gmra.mxu3 %vm138_vm5, %v3263_v30  ;;  %2086 = vmatmul.msk.f32.vlgmr.msra.gmra.mxu2 %vm138_vm5, %v3263_v30 }
 0x373   :  { %1474 = vmatpush.msra.mxu3 %v1298_v55 }
 0x375   :  { %1475 = vmatpush.msra.mxu3 %v1295_v29 }
 0x377   :  { %1476 = vmatpush.msra.mxu3 %v1292_v56 }
 0x379   :  { %1477 = vmatpush.msra.mxu3 %v1289_v53 }
 0x37a   :  { %2079 = vmatmul.msk.f32.gmra.mxu3 %vm138_vm5, %v3267_v47  ;;  %2087 = vmatmul.msk.f32.gmra.mxu2 %vm138_vm5, %v3267_v47 }
 0x382   :  { %2080 = vmatmul.msk.f32.gmra.mxu3 %vm138_vm5, %v3271_v62  ;;  %2088 = vmatmul.msk.f32.gmra.mxu2 %vm138_vm5, %v3271_v62 }
 0x38a   :  { %2081 = vmatmul.msk.f32.gmra.mxu3 %vm138_vm5, %v1304_v24  ;;  %2089 = vmatmul.msk.f32.gmra.mxu2 %vm138_vm5, %v1304_v24 }
 0x392   :  { %2090 = vmatmul.msk.f32.vlgmr.msra.gmra.mxu3 %vm138_vm5, %v3263_v30 }
 0x395   :  { %v3321_v60 = vpop.permute.xlu2 %1646 }
 0x39a   :  { %2091 = vmatmul.msk.f32.gmra.mxu3 %vm138_vm5, %v3267_v47 }
 0x3a2   :  { %2092 = vmatmul.msk.f32.gmra.mxu3 %vm138_vm5, %v3271_v62 }
 0x3a6   :  { %v3329_v53 = vpop.permute.xlu1 %1611 }
 0x3a7   :  { %vm1614_vm2 = vcmp.eq.s32.totalorder %v3329_v53, 1 }
 0x3a9   :  { %v3327_v34 = vpop.permute.xlu2 %1650 }
 0x3aa   :  { %2093 = vmatmul.msk.f32.gmra.mxu3 %vm138_vm5, %v1304_v24 }
 0x3af   :  { %v1334_v51 = vpop.f32.mrf.mxu1 }
 0x3b0   :  { %v1505_v47 = vsel %vm1503_vm7, %v1334_v51, %v3188_v15 }
 0x3b1   :  { %v1553_v62 = vsub.f32 1.0, %v1505_v47  ;;  %vm1529_vm8 = vcmp.lt.f32.partialorder %v1505_v47, 0.5019608  ;;  %v3344_v46 = vpop.permute.xlu2 %1692 }
 0x3b3   :  { %v1577_v31 = vsel %vm1529_vm8, %v1505_v47, %v1553_v62 }
 0x3b4   :  { %v1615_v42 = vsel %vm1613_vm9, %v1577_v31, %v1505_v47 }
 0x3b5   :  { %v1657_v21 = vsub.f32 %v1615_v42, %v3321_v60 }
 0x3b7   :  { %v1337_v63 = vpop.f32.mrf.mxu1 }
 0x3b8   :  { %v1506_v11 = vsel %vm1503_vm7, %v1337_v63, %v3190_v23 }
 0x3b9   :  { %v1554_v29 = vsub.f32 1.0, %v1506_v11  ;;  %vm1530_vm11 = vcmp.lt.f32.partialorder %v1506_v11, 0.5019608 }
 0x3bb   :  { %v1578_v27 = vsel %vm1530_vm11, %v1506_v11, %v1554_v29 }
 0x3bc   :  { %v1616_v55 = vsel %vm1613_vm9, %v1578_v27, %v1506_v11 }
 0x3bd   :  { %v1658_v8 = vsub.f32 %v1616_v55, %v3321_v60 }
 0x3bf   :  { %v1340_v30 = vpop.f32.mrf.mxu1 }
 0x3c5   :  { %v3342_v44 = vpop.permute.xlu1 %1688 }
 0x3c6   :  { %v1699_v37 = vmul.f32 %v3342_v44, %v1657_v21  ;;  %v1700_v47 = vmul.f32 %v3342_v44, %v1658_v8  ;;  %v3371_v21 = vpop.permute.xlu0 %1501 }
 0x3c7   :  { %v1343_v1 = vpop.f32.mrf.mxu1  ;;  %vm1504_vm1 = vcmp.eq.s32.totalorder %v3371_v21, 1 }
 0x3c8   :  { %1723 = vst.msk [vmem:[#allocation10] sm:$0xff] %vm138_vm5, %v1699_v37 }
 0x3c9   :  { %1724 = vst.msk [vmem:[#allocation10 + $0x8] sm:$0xff] %vm138_vm5, %v1700_v47 }
 0x3cf   :  { %v1421_v62 = vpop.f32.mrf.mxu1 }
 0x3d5   :  { %v1363_v0 = vpop.f32.mrf.mxu2 }
 0x3d6   :  { %v1509_v49 = vsel %vm1503_vm7, %v1363_v0, %v3192_v52  ;;  %v1507_v0 = vsel %vm1503_vm7, %v1340_v30, %v3196_v32 }
 0x3d7   :  { %vm1533_vm10 = vcmp.lt.f32.partialorder %v1509_v49, 0.5019608  ;;  %v1557_v9 = vsub.f32 1.0, %v1509_v49  ;;  %vm1531_vm13 = vcmp.lt.f32.partialorder %v1507_v0, 0.5019608 }
 0x3d9   :  { %v1581_v24 = vsel %vm1533_vm10, %v1509_v49, %v1557_v9 }
 0x3da   :  { %v1619_v56 = vsel %vm1613_vm9, %v1581_v24, %v1509_v49  ;;  %v1555_v49 = vsub.f32 1.0, %v1507_v0 }
 0x3db   :  { %v1661_v45 = vsub.f32 %v1619_v56, %v3327_v34 }
 0x3dc   :  { %v1579_v24 = vsel %vm1531_vm13, %v1507_v0, %v1555_v49 }
 0x3dd   :  { %v1366_v36 = vpop.f32.mrf.mxu2  ;;  %v1703_v4 = vmul.f32 %v3344_v46, %v1661_v45  ;;  %v1617_v37 = vsel %vm1613_vm9, %v1579_v24, %v1507_v0 }
 0x3de   :  { %v1510_v7 = vsel %vm1503_vm7, %v1366_v36, %v3194_v38  ;;  %v1659_v11 = vsub.f32 %v1617_v37, %v3321_v60  ;;  %v1517_v37 = vsel %vm1504_vm1, %v1421_v62, %v3130_v26 }
 0x3df   :  { %vm1534_vm12 = vcmp.lt.f32.partialorder %v1510_v7, 0.5019608  ;;  %v1558_v3 = vsub.f32 1.0, %v1510_v7  ;;  %1727 = vst.msk [vmem:[#allocation10 + $0x20] sm:$0xff] %vm138_vm5, %v1703_v4  ;;  %v1424_v4 = vpop.f32.mrf.mxu1  ;;  %vm1541_vm3 = vcmp.lt.f32.partialorder %v1517_v37, 0.5019608 }
 0x3e0   :  { %v1701_v36 = vmul.f32 %v3342_v44, %v1659_v11 }
 0x3e1   :  { %v1582_v51 = vsel %vm1534_vm12, %v1510_v7, %v1558_v3 }
 0x3e2   :  { %v1620_v63 = vsel %vm1613_vm9, %v1582_v51, %v1510_v7  ;;  %v1508_v7 = vsel %vm1503_vm7, %v1343_v1, %v3198_v25  ;;  %1725 = vst.msk [vmem:[#allocation10 + $0x10] sm:$0xff] %vm138_vm5, %v1701_v36  ;;  %v3396_v1 = vpop.permute.xlu0 %1654 }
 0x3e3   :  { %v1662_v31 = vsub.f32 %v1620_v63, %v3327_v34  ;;  %v1556_v55 = vsub.f32 1.0, %v1508_v7  ;;  %vm1532_vm15 = vcmp.lt.f32.partialorder %v1508_v7, 0.5019608 }
 0x3e5   :  { %v1369_v9 = vpop.f32.mrf.mxu2  ;;  %v1704_v42 = vmul.f32 %v3344_v46, %v1662_v31  ;;  %v1580_v51 = vsel %vm1532_vm15, %v1508_v7, %v1556_v55 }
 0x3e6   :  { %v1511_v56 = vsel %vm1503_vm7, %v1369_v9, %v3200_v39  ;;  %v1618_v47 = vsel %vm1613_vm9, %v1580_v51, %v1508_v7 }
 0x3e7   :  { %vm1535_vm14 = vcmp.lt.f32.partialorder %v1511_v56, 0.5019608  ;;  %v1559_v30 = vsub.f32 1.0, %v1511_v56  ;;  %1728 = vst.msk [vmem:[#allocation10 + $0x28] sm:$0xff] %vm138_vm5, %v1704_v42  ;;  %v1660_v31 = vsub.f32 %v1618_v47, %v3321_v60  ;;  %v1427_v24 = vpop.f32.mrf.mxu1 }
 0x3e9   :  { %v1583_v45 = vsel %vm1535_vm14, %v1511_v56, %v1559_v30  ;;  %v1702_v9 = vmul.f32 %v3342_v44, %v1660_v31  ;;  %v1565_v30 = vsub.f32 1.0, %v1517_v37 }
 0x3ea   :  { %v1621_v29 = vsel %vm1613_vm9, %v1583_v45, %v1511_v56 }
 0x3eb   :  { %v1663_v27 = vsub.f32 %v1621_v29, %v3327_v34  ;;  %1726 = vst.msk [vmem:[#allocation10 + $0x18] sm:$0xff] %vm138_vm5, %v1702_v9 }
 0x3ed   :  { %v1705_v3 = vmul.f32 %v3344_v46, %v1663_v27  ;;  %v1372_v8 = vpop.f32.mrf.mxu2  ;;  %v1589_v27 = vsel %vm1541_vm3, %v1517_v37, %v1565_v30 }
 0x3ee   :  { %v1512_v63 = vsel %vm1503_vm7, %v1372_v8, %v3202_v43  ;;  %v1627_v55 = vsel %vm1614_vm2, %v1589_v27, %v1517_v37  ;;  %v1519_v37 = vsel %vm1504_vm1, %v1427_v24, %v3146_v59 }
 0x3ef   :  { %1729 = vst.msk [vmem:[#allocation10 + $0x30] sm:$0xff] %vm138_vm5, %v1705_v3  ;;  %vm1536_vm0 = vcmp.lt.f32.partialorder %v1512_v63, 0.5019608  ;;  %v1560_v0 = vsub.f32 1.0, %v1512_v63  ;;  %v1669_v3 = vsub.f32 %v1627_v55, %v3321_v60  ;;  %vm1543_vm10 = vcmp.lt.f32.partialorder %v1519_v37, 0.5019608 }
 0x3f1   :  { %v1584_v49 = vsel %vm1536_vm0, %v1512_v63, %v1560_v0  ;;  %v1711_v0 = vmul.f32 %v3342_v44, %v1669_v3 }
 0x3f2   :  { %v1622_v42 = vsel %vm1613_vm9, %v1584_v49, %v1512_v63  ;;  %v3419_v63 = vpop.permute.xlu0 %1696  ;;  %v1430_v49 = vpop.f32.mrf.mxu1 }
 0x3f3   :  { %v1664_v56 = vsub.f32 %v1622_v42, %v3327_v34  ;;  %1735 = vst.msk [vmem:[#allocation10 + $0x60] sm:$0xff] %vm138_vm5, %v1711_v0 }
 0x3f5   :  { %v1392_v11 = vpop.f32.mrf.mxu3  ;;  %v1706_v45 = vmul.f32 %v3344_v46, %v1664_v56  ;;  %v1450_v29 = vpop.f32.mrf.mxu2  ;;  %v1518_v56 = vsel %vm1504_vm1, %v1424_v4, %v3134_v40 }
 0x3f6   :  { %v1513_v36 = vsel %vm1503_vm7, %v1392_v11, %v3204_v58  ;;  %v1521_v7 = vsel %vm1504_vm1, %v1450_v29, %v3138_v41  ;;  %v1566_v11 = vsub.f32 1.0, %v1518_v56  ;;  %v1520_v29 = vsel %vm1504_vm1, %v1430_v49, %v3150_v22 }
 0x3f7   :  { %vm1537_vm4 = vcmp.lt.f32.partialorder %v1513_v36, 0.5019608  ;;  %v1561_v62 = vsub.f32 1.0, %v1513_v36  ;;  %1730 = vst.msk [vmem:[#allocation10 + $0x38] sm:$0xff] %vm138_vm5, %v1706_v45  ;;  %vm1545_vm6 = vcmp.lt.f32.partialorder %v1521_v7, 0.5019608 }
 0x3f8   :  { %v1569_v8 = vsub.f32 1.0, %v1521_v7  ;;  %v1567_v45 = vsub.f32 1.0, %v1519_v37  ;;  %vm1542_vm8 = vcmp.lt.f32.partialorder %v1518_v56, 0.5019608  ;;  %vm1544_vm11 = vcmp.lt.f32.partialorder %v1520_v29, 0.5019608 }
 0x3f9   :  { %v1585_v51 = vsel %vm1537_vm4, %v1513_v36, %v1561_v62  ;;  %v1590_v62 = vsel %vm1542_vm8, %v1518_v56, %v1566_v11 }
 0x3fa   :  { %v1623_v47 = vsel %vm1613_vm9, %v1585_v51, %v1513_v36  ;;  %v1593_v31 = vsel %vm1545_vm6, %v1521_v7, %v1569_v8  ;;  %v1628_v8 = vsel %vm1614_vm2, %v1590_v62, %v1518_v56  ;;  %v1591_v0 = vsel %vm1543_vm10, %v1519_v37, %v1567_v45 }
 0x3fb   :  { %v1665_v9 = vsub.f32 %v1623_v47, %v3396_v1  ;;  %v1631_v42 = vsel %vm1614_vm2, %v1593_v31, %v1521_v7  ;;  %v1670_v51 = vsub.f32 %v1628_v8, %v3321_v60  ;;  %v1568_v31 = vsub.f32 1.0, %v1520_v29 }
 0x3fc   :  { %v1673_v30 = vsub.f32 %v1631_v42, %v3327_v34 }
 0x3fd   :  { %v1395_v36 = vpop.f32.mrf.mxu3  ;;  %v1707_v27 = vmul.f32 %v3419_v63, %v1665_v9  ;;  %v1453_v7 = vpop.f32.mrf.mxu2  ;;  %v1629_v9 = vsel %vm1614_vm2, %v1591_v0, %v1519_v37  ;;  %v1592_v45 = vsel %vm1544_vm11, %v1520_v29, %v1568_v31 }
 0x3fe   :  { %v1514_v4 = vsel %vm1503_vm7, %v1395_v36, %v3206_v28  ;;  %v1715_v24 = vmul.f32 %v3344_v46, %v1673_v30  ;;  %v1522_v55 = vsel %vm1504_vm1, %v1453_v7, %v3142_v48  ;;  %v1712_v30 = vmul.f32 %v3342_v44, %v1670_v51 }
 0x3ff   :  { %vm1538_vm12 = vcmp.lt.f32.partialorder %v1514_v4, 0.5019608  ;;  %v1562_v3 = vsub.f32 1.0, %v1514_v4  ;;  %1731 = vst.msk [vmem:[#allocation10 + $0x40] sm:$0xff] %vm138_vm5, %v1707_v27  ;;  %vm1546_vm13 = vcmp.lt.f32.partialorder %v1522_v55, 0.5019608  ;;  %v1671_v56 = vsub.f32 %v1629_v9, %v3321_v60 }
 0x400   :  { %1739 = vst.msk [vmem:[#allocation10 + $0x80] sm:$0xff] %vm138_vm5, %v1715_v24  ;;  %v1570_v47 = vsub.f32 1.0, %v1522_v55 }
 0x401   :  { %v1586_v49 = vsel %vm1538_vm12, %v1514_v4, %v1562_v3  ;;  %1736 = vst.msk [vmem:[#allocation10 + $0x68] sm:$0xff] %vm138_vm5, %v1712_v30  ;;  %v1713_v37 = vmul.f32 %v3342_v44, %v1671_v56 }
 0x402   :  { %v1624_v42 = vsel %vm1613_vm9, %v1586_v49, %v1514_v4  ;;  %v1594_v11 = vsel %vm1546_vm13, %v1522_v55, %v1570_v47  ;;  %v1630_v4 = vsel %vm1614_vm2, %v1592_v45, %v1520_v29 }
 0x403   :  { %v1666_v36 = vsub.f32 %v1624_v42, %v3396_v1  ;;  %v1632_v27 = vsel %vm1614_vm2, %v1594_v11, %v1522_v55  ;;  %v1672_v8 = vsub.f32 %v1630_v4, %v3321_v60  ;;  %1737 = vst.msk [vmem:[#allocation10 + $0x70] sm:$0xff] %vm138_vm5, %v1713_v37 }
 0x404   :  { %v1674_v7 = vsub.f32 %v1632_v27, %v3327_v34 }
 0x405   :  { %v1398_v24 = vpop.f32.mrf.mxu3  ;;  %v1708_v62 = vmul.f32 %v3419_v63, %v1666_v36  ;;  %v1456_v3 = vpop.f32.mrf.mxu2  ;;  %v1714_v0 = vmul.f32 %v3342_v44, %v1672_v8 }
 0x406   :  { %v1515_v55 = vsel %vm1503_vm7, %v1398_v24, %v3208_v57  ;;  %v1716_v51 = vmul.f32 %v3344_v46, %v1674_v7  ;;  %v1523_v47 = vsel %vm1504_vm1, %v1456_v3, %v3154_v6 }
 0x407   :  { %vm1539_vm14 = vcmp.lt.f32.partialorder %v1515_v55, 0.5019608  ;;  %v1563_v29 = vsub.f32 1.0, %v1515_v55  ;;  %1732 = vst.msk [vmem:[#allocation10 + $0x48] sm:$0xff] %vm138_vm5, %v1708_v62  ;;  %vm1547_vm15 = vcmp.lt.f32.partialorder %v1523_v47, 0.5019608 }
 0x408   :  { %1740 = vst.msk [vmem:[#allocation10 + $0x88] sm:$0xff] %vm138_vm5, %v1716_v51  ;;  %v1571_v60 = vsub.f32 1.0, %v1523_v47 }
 0x409   :  { %v1587_v31 = vsel %vm1539_vm14, %v1515_v55, %v1563_v29  ;;  %1738 = vst.msk [vmem:[#allocation10 + $0x78] sm:$0xff] %vm138_vm5, %v1714_v0 }
 0x40a   :  { %v1625_v49 = vsel %vm1613_vm9, %v1587_v31, %v1515_v55  ;;  %v1595_v9 = vsel %vm1547_vm15, %v1523_v47, %v1571_v60 }
 0x40b   :  { %v1667_v42 = vsub.f32 %v1625_v49, %v3396_v1  ;;  %v1633_v30 = vsel %vm1614_vm2, %v1595_v9, %v1523_v47 }
 0x40c   :  { %v1675_v11 = vsub.f32 %v1633_v30, %v3327_v34 }
 0x40d   :  { %v1401_v56 = vpop.f32.mrf.mxu3  ;;  %v1709_v44 = vmul.f32 %v3419_v63, %v1667_v42  ;;  %v1459_v36 = vpop.f32.mrf.mxu2 }
 0x40e   :  { %v1516_v27 = vsel %vm1503_vm7, %v1401_v56, %v3210_v54  ;;  %v1717_v45 = vmul.f32 %v3344_v46, %v1675_v11  ;;  %v1524_v7 = vsel %vm1504_vm1, %v1459_v36, %v3158_v2 }
 0x40f   :  { %vm1540_vm0 = vcmp.lt.f32.partialorder %v1516_v27, 0.5019608  ;;  %v1564_v37 = vsub.f32 1.0, %v1516_v27  ;;  %1733 = vst.msk [vmem:[#allocation10 + $0x50] sm:$0xff] %vm138_vm5, %v1709_v44  ;;  %vm1548_vm3 = vcmp.lt.f32.partialorder %v1524_v7, 0.5019608 }
 0x410   :  { %1741 = vst.msk [vmem:[#allocation10 + $0x90] sm:$0xff] %vm138_vm5, %v1717_v45  ;;  %v1572_v4 = vsub.f32 1.0, %v1524_v7 }
 0x411   :  { %v1588_v24 = vsel %vm1540_vm0, %v1516_v27, %v1564_v37 }
 0x412   :  { %v1626_v62 = vsel %vm1613_vm9, %v1588_v24, %v1516_v27  ;;  %v1596_v50 = vsel %vm1548_vm3, %v1524_v7, %v1572_v4 }
 0x413   :  { %v1668_v3 = vsub.f32 %v1626_v62, %v3396_v1  ;;  %v1634_v8 = vsel %vm1614_vm2, %v1596_v50, %v1524_v7 }
 0x414   :  { %v1676_v55 = vsub.f32 %v1634_v8, %v3327_v34 }
 0x415   :  { %v1710_v51 = vmul.f32 %v3419_v63, %v1668_v3  ;;  %v1479_v47 = vpop.f32.mrf.mxu3 }
 0x416   :  { %v1525_v29 = vsel %vm1504_vm1, %v1479_v47, %v3162_v20  ;;  %v1718_v0 = vmul.f32 %v3344_v46, %v1676_v55 }
 0x417   :  { %1734 = vst.msk [vmem:[#allocation10 + $0x58] sm:$0xff] %vm138_vm5, %v1710_v51  ;;  %vm1549_vm7 = vcmp.lt.f32.partialorder %v1525_v29, 0.5019608  ;;  %v1573_v5 = vsub.f32 1.0, %v1525_v29 }
 0x418   :  { %1742 = vst.msk [vmem:[#allocation10 + $0x98] sm:$0xff] %vm138_vm5, %v1718_v0 }
 0x419   :  { %v1597_v60 = vsel %vm1549_vm7, %v1525_v29, %v1573_v5 }
 0x41a   :  { %v1635_v31 = vsel %vm1614_vm2, %v1597_v60, %v1525_v29 }
 0x41b   :  { %v1677_v34 = vsub.f32 %v1635_v31, %v3396_v1 }
 0x41d   :  { %v1719_v49 = vmul.f32 %v3419_v63, %v1677_v34  ;;  %v1482_v9 = vpop.f32.mrf.mxu3 }
 0x41e   :  { %v1526_v42 = vsel %vm1504_vm1, %v1482_v9, %v3166_v33 }
 0x41f   :  { %1743 = vst.msk [vmem:[#allocation10 + $0xa0] sm:$0xff] %vm138_vm5, %v1719_v49  ;;  %vm1550_vm9 = vcmp.lt.f32.partialorder %v1526_v42, 0.5019608  ;;  %v1574_v46 = vsub.f32 1.0, %v1526_v42 }
 0x421   :  { %v1598_v30 = vsel %vm1550_vm9, %v1526_v42, %v1574_v46 }
 0x422   :  { %v1636_v11 = vsel %vm1614_vm2, %v1598_v30, %v1526_v42 }
 0x423   :  { %v1678_v56 = vsub.f32 %v1636_v11, %v3396_v1 }
 0x425   :  { %v1720_v44 = vmul.f32 %v3419_v63, %v1678_v56  ;;  %v1485_v36 = vpop.f32.mrf.mxu3 }
 0x426   :  { %v1527_v27 = vsel %vm1504_vm1, %v1485_v36, %v3170_v35 }
 0x427   :  { %1744 = vst.msk [vmem:[#allocation10 + $0xa8] sm:$0xff] %vm138_vm5, %v1720_v44  ;;  %vm1551_vm4 = vcmp.lt.f32.partialorder %v1527_v27, 0.5019608  ;;  %v1575_v45 = vsub.f32 1.0, %v1527_v27 }
 0x429   :  { %v1599_v7 = vsel %vm1551_vm4, %v1527_v27, %v1575_v45 }
 0x42a   :  { %v1637_v37 = vsel %vm1614_vm2, %v1599_v7, %v1527_v27 }
 0x42b   :  { %v1679_v4 = vsub.f32 %v1637_v37, %v3396_v1 }
 0x42d   :  { %v1721_v24 = vmul.f32 %v3419_v63, %v1679_v4  ;;  %v1488_v62 = vpop.f32.mrf.mxu3 }
 0x42e   :  { %v1528_v50 = vsel %vm1504_vm1, %v1488_v62, %v3174_v61 }
 0x42f   :  { %1745 = vst.msk [vmem:[#allocation10 + $0xb0] sm:$0xff] %vm138_vm5, %v1721_v24  ;;  %vm1552_vm6 = vcmp.lt.f32.partialorder %v1528_v50, 0.5019608  ;;  %v1576_v3 = vsub.f32 1.0, %v1528_v50 }
 0x431   :  { %v1600_v8 = vsel %vm1552_vm6, %v1528_v50, %v1576_v3 }
 0x432   :  { %v1638_v55 = vsel %vm1614_vm2, %v1600_v8, %v1528_v50 }
 0x433   :  { %v1680_v51 = vsub.f32 %v1638_v55, %v3396_v1 }
 0x435   :  { %v1722_v47 = vmul.f32 %v3419_v63, %v1680_v51 }
 0x437   :  { %1746 = vst.msk [vmem:[#allocation10 + $0xb8] sm:$0xff] %vm138_vm5, %v1722_v47 }
 0x438 PF:  { %p2094_p1 = scmp.ne.s32.totalorder %s3807_s0, 0 }
 0x43a   :  { %1750 = sbr.rel (%p2094_p1) target bundleno = 1240 (0x4d8), region = 45 }
 0x43f   :  { %v1864_v21 = vperm.slane %v2350_v13, 0  ;;  %vm1823_vm1 = vcmp.gt.f32.partialorder %v2335_v10, 0.5  ;;  %v2260_v29 = vmov 0   ;;  %vm1824_vm2 = vcmp.gt.f32.partialorder %v2345_v12, 0.5 }
 0x440   :  { %2146 = vset.pattern.permute.xlu1 %v2260_v29  ;;  %2145 = vset.pattern.permute.xlu0 %v2260_v29  ;;  %v1825_v53 = vsel %vm1823_vm1, 1, %v2260_v29  ;;  %v1866_v63 = vperm.slane %v2362_v16, 0  ;;  %v1826_v0 = vsel %vm1824_vm2, 1, %v2260_v29  ;;  %v1865_v5 = vperm.slane %v2355_v14, 0 }
 0x441   :  { %1868 = vperm.xlu1 %2146, %v1864_v21   ;;  %v1827_v1 = vperm.slane %v1825_v53, 0  ;;  %2147 = vset.pattern.permute.xlu2 %v2260_v29  ;;  %v1828_v60 = vperm.slane %v1826_v0, 0  ;;  %v1906_v13 = vperm.slane %v2367_v17, 0  ;;  %v1908_v10 = vperm.slane %v2377_v19, 0 }
 0x442   :  { %1876 = vperm.xlu2 %2147, %v1866_v63   ;;  %v1907_v31 = vperm.slane %v2372_v18, 0  ;;  %v1775_v12 = vsub.f32 1.0, %v3188_v15  ;;  %vm1751_vm8 = vcmp.lt.f32.partialorder %v3188_v15, 0.5019608  ;;  %vm1752_vm10 = vcmp.lt.f32.partialorder %v3190_v23, 0.5019608 }
 0x443   :  { %1830 = vperm.xlu0 %2145, %v1827_v1   ;;  %v1776_v14 = vsub.f32 1.0, %v3190_v23  ;;  %v1777_v16 = vsub.f32 1.0, %v3196_v32  ;;  %vm1753_vm11 = vcmp.lt.f32.partialorder %v3196_v32, 0.5019608  ;;  %vm1754_vm12 = vcmp.lt.f32.partialorder %v3198_v25, 0.5019608 }
 0x444   :  { %v1778_v18 = vsub.f32 1.0, %v3198_v25  ;;  %v1783_v19 = vsub.f32 1.0, %v3204_v58  ;;  %vm1759_vm13 = vcmp.lt.f32.partialorder %v3204_v58, 0.5019608  ;;  %v1784_v34 = vsub.f32 1.0, %v3206_v28 }
 0x445   :  { %v1785_v49 = vsub.f32 1.0, %v3208_v57  ;;  %v1786_v9 = vsub.f32 1.0, %v3210_v54  ;;  %vm1760_vm14 = vcmp.lt.f32.partialorder %v3206_v28, 0.5019608  ;;  %vm1761_vm15 = vcmp.lt.f32.partialorder %v3208_v57, 0.5019608 }
 0x446   :  { %vm1762_vm0 = vcmp.lt.f32.partialorder %v3210_v54, 0.5019608  ;;  %v1799_v42 = vsel %vm1751_vm8, %v3188_v15, %v1775_v12  ;;  %v1800_v46 = vsel %vm1752_vm10, %v3190_v23, %v1776_v14  ;;  %v1779_v30 = vsub.f32 1.0, %v3192_v52 }
 0x447   :  { %v1801_v11 = vsel %vm1753_vm11, %v3196_v32, %v1777_v16  ;;  %v1802_v56 = vsel %vm1754_vm12, %v3198_v25, %v1778_v18  ;;  %v1807_v44 = vsel %vm1759_vm13, %v3204_v58, %v1783_v19  ;;  %vm1755_vm3 = vcmp.lt.f32.partialorder %v3192_v52, 0.5019608 }
 0x448   :  { %v1808_v36 = vsel %vm1760_vm14, %v3206_v28, %v1784_v34  ;;  %v3580_v27 = vsel %vm1761_vm15, %v3208_v57, %v1785_v49  ;;  %v3583_v45 = vsel %vm1762_vm0, %v3210_v54, %v1786_v9  ;;  %v1780_v7 = vsub.f32 1.0, %v3194_v38 }
 0x449   :  { %1872 = vperm.xlu1 %2146, %v1865_v5   ;;  %vm1763_vm7 = vcmp.lt.f32.partialorder %v3130_v26, 0.5019608  ;;  %vm1756_vm9 = vcmp.lt.f32.partialorder %v3194_v38, 0.5019608  ;;  %v1781_v4 = vsub.f32 1.0, %v3200_v39  ;;  %v1782_v24 = vsub.f32 1.0, %v3202_v43 }
 0x44a   :  { %1910 = vperm.xlu2 %2147, %v1906_v13   ;;  %vm1764_vm4 = vcmp.lt.f32.partialorder %v3134_v40, 0.5019608  ;;  %vm1765_vm6 = vcmp.lt.f32.partialorder %v3146_v59, 0.5019608  ;;  %vm1766_vm1 = vcmp.lt.f32.partialorder %v3150_v22, 0.5019608  ;;  %v3596_v62 = vsel %vm1755_vm3, %v3192_v52, %v1779_v30 }
 0x44b   :  { %1833 = vperm.xlu0 %2145, %v1828_v60   ;;  %v1787_v3 = vsub.f32 1.0, %v3130_v26  ;;  %v1788_v8 = vsub.f32 1.0, %v3134_v40  ;;  %v1789_v55 = vsub.f32 1.0, %v3146_v59  ;;  %v1790_v51 = vsub.f32 1.0, %v3150_v22 }
 0x44c   :  { %vm1771_vm8 = vcmp.lt.f32.partialorder %v3162_v20, 0.5019608  ;;  %vm1772_vm10 = vcmp.lt.f32.partialorder %v3166_v33, 0.5019608  ;;  %v1795_v47 = vsub.f32 1.0, %v3162_v20  ;;  %v1797_v13 = vsub.f32 1.0, %v3170_v35 }
 0x44d   :  { %vm1773_vm11 = vcmp.lt.f32.partialorder %v3170_v35, 0.5019608  ;;  %v1798_v12 = vsub.f32 1.0, %v3174_v61  ;;  %v1812_v18 = vsel %vm1764_vm4, %v3134_v40, %v1788_v8  ;;  %v1813_v19 = vsel %vm1765_vm6, %v3146_v59, %v1789_v55 }
 0x44e   :  { %vm1774_vm12 = vcmp.lt.f32.partialorder %v3174_v61, 0.5019608  ;;  %v1814_v34 = vsel %vm1766_vm1, %v3150_v22, %v1790_v51  ;;  %v1819_v49 = vsel %vm1771_vm8, %v3162_v20, %v1795_v47  ;;  %vm1757_vm13 = vcmp.lt.f32.partialorder %v3200_v39, 0.5019608 }
 0x44f   :  { %vm1758_vm14 = vcmp.lt.f32.partialorder %v3202_v43, 0.5019608  ;;  %v3652_v9 = vsel %vm1756_vm9, %v3194_v38, %v1780_v7  ;;  %v1821_v30 = vsel %vm1773_vm11, %v3170_v35, %v1797_v13  ;;  %v1822_v7 = vsel %vm1774_vm12, %v3174_v61, %v1798_v12 }
 0x450   :  { %vm1767_vm0 = vcmp.lt.f32.partialorder %v3138_v41, 0.5019608  ;;  %vm1768_vm3 = vcmp.lt.f32.partialorder %v3142_v48, 0.5019608  ;;  %vm1770_vm9 = vcmp.lt.f32.partialorder %v3158_v2, 0.5019608 }
 0x451   :  { %1918 = vperm.xlu1 %2146, %v1908_v10  }
 0x453   :  { %1914 = vperm.xlu0 %2145, %v1907_v31  }
 0x49c   :  { %v3554_v17 = vpop.permute.xlu2 %1876 }
 0x4a4   :  { %v1911_v21 = vpop.permute.xlu2 %1910 }
 0x4b3   :  { %v3586_v37 = vpop.permute.xlu1 %1868 }
 0x4b5   :  { %v3598_v50 = vpop.permute.xlu0 %1830 }
 0x4b6   :  { %vm1835_vm2 = vcmp.eq.s32.totalorder %v3598_v50, 1 }
 0x4b7   :  { %v1837_v29 = vsel %vm1835_vm2, %v1799_v42, %v3188_v15  ;;  %v1838_v53 = vsel %vm1835_vm2, %v1800_v46, %v3190_v23  ;;  %v1839_v1 = vsel %vm1835_vm2, %v1801_v11, %v3196_v32  ;;  %v1840_v63 = vsel %vm1835_vm2, %v1802_v56, %v3198_v25 }
 0x4b8   :  { %v1879_v0 = vsub.f32 %v1837_v29, %v3586_v37  ;;  %v1880_v5 = vsub.f32 %v1838_v53, %v3586_v37  ;;  %v1881_v60 = vsub.f32 %v1839_v1, %v3586_v37  ;;  %v1882_v15 = vsub.f32 %v1840_v63, %v3586_v37 }
 0x4b9   :  { %v1811_v23 = vsel %vm1763_vm7, %v3130_v26, %v1787_v3  ;;  %v1796_v32 = vsub.f32 1.0, %v3166_v33  ;;  %v1791_v11 = vsub.f32 1.0, %v3138_v41  ;;  %v1792_v56 = vsub.f32 1.0, %v3142_v48 }
 0x4ba   :  { %v1921_v10 = vmul.f32 %v1911_v21, %v1879_v0  ;;  %v1922_v25 = vmul.f32 %v1911_v21, %v1880_v5  ;;  %v1923_v31 = vmul.f32 %v1911_v21, %v1881_v60  ;;  %v1924_v14 = vmul.f32 %v1911_v21, %v1882_v15 }
 0x4bb   :  { %v3631_v16 = vpop.permute.xlu1 %1872  ;;  %v1820_v46 = vsel %vm1772_vm10, %v3166_v33, %v1796_v32  ;;  %v1845_v3 = vsel %vm1835_vm2, %v1807_v44, %v3204_v58  ;;  %v1846_v8 = vsel %vm1835_vm2, %v1808_v36, %v3206_v28  ;;  %vm1769_vm7 = vcmp.lt.f32.partialorder %v3154_v6, 0.5019608 }
 0x4bc   :  { %1945 = vst.msk [vmem:[#allocation10] sm:$0xff] %vm138_vm5, %v1921_v10  ;;  %v1887_v1 = vsub.f32 %v1845_v3, %v3554_v17  ;;  %v1793_v60 = vsub.f32 1.0, %v3154_v6  ;;  %v1794_v32 = vsub.f32 1.0, %v3158_v2  ;;  %v1805_v10 = vsel %vm1757_vm13, %v3200_v39, %v1781_v4 }
 0x4bd   :  { %1946 = vst.msk [vmem:[#allocation10 + $0x8] sm:$0xff] %vm138_vm5, %v1922_v25  ;;  %v3655_v42 = vpop.permute.xlu0 %1833  ;;  %v1815_v12 = vsel %vm1767_vm0, %v3138_v41, %v1791_v11 }
 0x4be   :  { %1947 = vst.msk [vmem:[#allocation10 + $0x10] sm:$0xff] %vm138_vm5, %v1923_v31  ;;  %vm1836_vm15 = vcmp.eq.s32.totalorder %v3655_v42, 1 }
 0x4bf   :  { %1948 = vst.msk [vmem:[#allocation10 + $0x18] sm:$0xff] %vm138_vm5, %v1924_v14  ;;  %v1849_v55 = vsel %vm1836_vm15, %v1811_v23, %v3130_v26  ;;  %v1850_v51 = vsel %vm1836_vm15, %v1812_v18, %v3134_v40  ;;  %v1851_v47 = vsel %vm1836_vm15, %v1813_v19, %v3146_v59  ;;  %v1852_v58 = vsel %vm1836_vm15, %v1814_v34, %v3150_v22 }
 0x4c0   :  { %v1891_v28 = vsub.f32 %v1849_v55, %v3586_v37  ;;  %v1892_v44 = vsub.f32 %v1850_v51, %v3586_v37  ;;  %v1893_v36 = vsub.f32 %v1851_v47, %v3586_v37  ;;  %v1894_v26 = vsub.f32 %v1852_v58, %v3586_v37 }
 0x4c1   :  { %v1847_v40 = vsel %vm1835_vm2, %v3580_v27, %v3208_v57  ;;  %v1848_v59 = vsel %vm1835_vm2, %v3583_v45, %v3210_v54  ;;  %v1857_v57 = vsel %vm1836_vm15, %v1819_v49, %v3162_v20  ;;  %v1888_v27 = vsub.f32 %v1846_v8, %v3554_v17 }
 0x4c2   :  { %v1933_v22 = vmul.f32 %v1911_v21, %v1891_v28  ;;  %v1934_v29 = vmul.f32 %v1911_v21, %v1892_v44  ;;  %v1935_v53 = vmul.f32 %v1911_v21, %v1893_v36  ;;  %v1936_v37 = vmul.f32 %v1911_v21, %v1894_v26 }
 0x4c3   :  { %v1919_v63 = vpop.permute.xlu1 %1918  ;;  %v1858_v54 = vsel %vm1836_vm15, %v1820_v46, %v3166_v33  ;;  %v1889_v45 = vsub.f32 %v1847_v40, %v3554_v17  ;;  %v1859_v20 = vsel %vm1836_vm15, %v1821_v30, %v3170_v35  ;;  %v1890_v21 = vsub.f32 %v1848_v59, %v3554_v17 }
 0x4c4   :  { %1957 = vst.msk [vmem:[#allocation10 + $0x60] sm:$0xff] %vm138_vm5, %v1933_v22  ;;  %v1929_v0 = vmul.f32 %v1919_v63, %v1887_v1  ;;  %v1930_v5 = vmul.f32 %v1919_v63, %v1888_v27  ;;  %v1860_v33 = vsel %vm1836_vm15, %v1822_v7, %v3174_v61  ;;  %v1899_v15 = vsub.f32 %v1857_v57, %v3554_v17 }
 0x4c5   :  { %1958 = vst.msk [vmem:[#allocation10 + $0x68] sm:$0xff] %vm138_vm5, %v1934_v29  ;;  %v1931_v23 = vmul.f32 %v1919_v63, %v1889_v45  ;;  %v1900_v35 = vsub.f32 %v1858_v54, %v3554_v17  ;;  %v1932_v13 = vmul.f32 %v1919_v63, %v1890_v21  ;;  %v1806_v61 = vsel %vm1758_vm14, %v3202_v43, %v1782_v24  ;;  %v1915_v19 = vpop.permute.xlu0 %1914 }
 0x4c6   :  { %1959 = vst.msk [vmem:[#allocation10 + $0x70] sm:$0xff] %vm138_vm5, %v1935_v53  ;;  %v1901_v25 = vsub.f32 %v1859_v20, %v3554_v17  ;;  %v1941_v31 = vmul.f32 %v1919_v63, %v1899_v15  ;;  %v1816_v14 = vsel %vm1768_vm3, %v3142_v48, %v1792_v56  ;;  %v1902_v4 = vsub.f32 %v1860_v33, %v3554_v17 }
 0x4c7   :  { %1960 = vst.msk [vmem:[#allocation10 + $0x78] sm:$0xff] %vm138_vm5, %v1936_v37  ;;  %v1942_v18 = vmul.f32 %v1919_v63, %v1900_v35  ;;  %v1817_v24 = vsel %vm1769_vm7, %v3154_v6, %v1793_v60  ;;  %v1841_v34 = vsel %vm1835_vm2, %v3596_v62, %v3192_v52  ;;  %v1818_v17 = vsel %vm1770_vm9, %v3158_v2, %v1794_v32 }
 0x4c8   :  { %1953 = vst.msk [vmem:[#allocation10 + $0x40] sm:$0xff] %vm138_vm5, %v1929_v0  ;;  %v1943_v49 = vmul.f32 %v1919_v63, %v1901_v25  ;;  %v1842_v46 = vsel %vm1835_vm2, %v3652_v9, %v3194_v38  ;;  %v1883_v30 = vsub.f32 %v1841_v34, %v3631_v16  ;;  %v1944_v11 = vmul.f32 %v1919_v63, %v1902_v4 }
 0x4c9   :  { %1954 = vst.msk [vmem:[#allocation10 + $0x48] sm:$0xff] %vm138_vm5, %v1930_v5  ;;  %v1843_v52 = vsel %vm1835_vm2, %v1805_v10, %v3200_v39  ;;  %v1853_v62 = vsel %vm1836_vm15, %v1815_v12, %v3138_v41  ;;  %v1884_v56 = vsub.f32 %v1842_v46, %v3631_v16  ;;  %v1844_v38 = vsel %vm1835_vm2, %v1806_v61, %v3202_v43 }
 0x4ca   :  { %1955 = vst.msk [vmem:[#allocation10 + $0x50] sm:$0xff] %vm138_vm5, %v1931_v23  ;;  %v1854_v9 = vsel %vm1836_vm15, %v1816_v14, %v3142_v48  ;;  %v1885_v7 = vsub.f32 %v1843_v52, %v3631_v16  ;;  %v1925_v3 = vmul.f32 %v1915_v19, %v1883_v30  ;;  %v1855_v41 = vsel %vm1836_vm15, %v1817_v24, %v3154_v6 }
 0x4cb   :  { %1956 = vst.msk [vmem:[#allocation10 + $0x58] sm:$0xff] %vm138_vm5, %v1932_v13  ;;  %v1886_v39 = vsub.f32 %v1844_v38, %v3631_v16  ;;  %v1926_v8 = vmul.f32 %v1915_v19, %v1884_v56  ;;  %v1856_v43 = vsel %vm1836_vm15, %v1818_v17, %v3158_v2  ;;  %v1895_v48 = vsub.f32 %v1853_v62, %v3631_v16 }
 0x4cc   :  { %1965 = vst.msk [vmem:[#allocation10 + $0xa0] sm:$0xff] %vm138_vm5, %v1941_v31  ;;  %v1927_v50 = vmul.f32 %v1915_v19, %v1885_v7  ;;  %v1896_v55 = vsub.f32 %v1854_v9, %v3631_v16  ;;  %v1897_v47 = vsub.f32 %v1855_v41, %v3631_v16  ;;  %v1898_v58 = vsub.f32 %v1856_v43, %v3631_v16 }
 0x4cd   :  { %1966 = vst.msk [vmem:[#allocation10 + $0xa8] sm:$0xff] %vm138_vm5, %v1942_v18  ;;  %v1928_v51 = vmul.f32 %v1915_v19, %v1886_v39  ;;  %v1937_v6 = vmul.f32 %v1915_v19, %v1895_v48 }
 0x4ce   :  { %1967 = vst.msk [vmem:[#allocation10 + $0xb0] sm:$0xff] %vm138_vm5, %v1943_v49  ;;  %v1938_v28 = vmul.f32 %v1915_v19, %v1896_v55  ;;  %v1939_v42 = vmul.f32 %v1915_v19, %v1897_v47  ;;  %v1940_v2 = vmul.f32 %v1915_v19, %v1898_v58 }
 0x4cf   :  { %1968 = vst.msk [vmem:[#allocation10 + $0xb8] sm:$0xff] %vm138_vm5, %v1944_v11 }
 0x4d0   :  { %1949 = vst.msk [vmem:[#allocation10 + $0x20] sm:$0xff] %vm138_vm5, %v1925_v3 }
 0x4d1   :  { %1950 = vst.msk [vmem:[#allocation10 + $0x28] sm:$0xff] %vm138_vm5, %v1926_v8 }
 0x4d2   :  { %1951 = vst.msk [vmem:[#allocation10 + $0x30] sm:$0xff] %vm138_vm5, %v1927_v50 }
 0x4d3   :  { %1952 = vst.msk [vmem:[#allocation10 + $0x38] sm:$0xff] %vm138_vm5, %v1928_v51 }
 0x4d4   :  { %1961 = vst.msk [vmem:[#allocation10 + $0x80] sm:$0xff] %vm138_vm5, %v1937_v6 }
 0x4d5   :  { %1962 = vst.msk [vmem:[#allocation10 + $0x88] sm:$0xff] %vm138_vm5, %v1938_v28 }
 0x4d6   :  { %1963 = vst.msk [vmem:[#allocation10 + $0x90] sm:$0xff] %vm138_vm5, %v1939_v42 }
 0x4d7   :  { %1964 = vst.msk [vmem:[#allocation10 + $0x98] sm:$0xff] %vm138_vm5, %v1940_v2 }
 0x4d8 PF:  { %s1975_s4 = sshll.u32 %s3814_s7, 4  ;;  %s2261_s2 = smov [#allocation10]   ;;  %s1976_s4 = int_to_ptr.hbm [resolvable:$true] %s1975_s4 }
 0x4d9   :  { %s1973_s1 = sshll.u32 %s2261_s2, 4  ;;  %s1974_s1 = int_to_ptr.vmem [resolvable:$true] %s1973_s1 }
 0x4da   :  { %1981 = dma.vmem_to_hbm [thread:$0]  %s1974_s1, 3072, %s1976_s4, [#allocation6], %s2251_s9, %s2251_s9, %s2252_s10  }
 0x4db   :  { %2248 = dma.done.wait [#allocation6], 3072  }
 0x4dc   :  { %2249 = vsyncadd [#allocation6], 4294964224 }
 0x4dd   :  { %1986 = vsyncpa [#allocation5], 1 }
 0x4de   :  { %1987 = vsyncpa [#allocation8], 1 }
 0x4df   :  { %1988 = vsyncpa [#allocation6], 1 }

</bundles_post_ra>
